<compile_context>
chip_gen: v6e
topology: v6e:2x2x1
jax: 0.10.0
libtpu: 0.0.40
codegen_flags: <defaults>
</compile_context>

<pallas_src>
import math

import jax
import jax.numpy as jnp
from jax.experimental import pallas as pl


# ----------------------------- configs ------------------------------------ #
class Configs:
    task_name = "long_term_forecast"
    seq_len = 16
    pred_len = 8
    patch_len = 4
    stride = 4
    d_model = 32
    d_state = 16
    dropout = 0.0        # eval mode -> identity
    e_layers = 2
    enc_in = 4
    RevIN_mode = 1


CFG = Configs()
PATCH_NUM = int((CFG.seq_len - CFG.patch_len) / CFG.stride + 2)        # 5
PD = PATCH_NUM * CFG.d_model                                           # 160
HEAD_NF = PD                                                           # 160


# ----------------------------- fused Pallas kernel ------------------------- #
def _fused_forward_kernel(x_ref, wemb_ref, pos_ref, mavg_ref,
                          tconv_ref, bconv_ref,
                          wa_ref, wb_ref, ba_ref, bb_ref,
                          whead_ref, bhead_ref, o_ref):
    # ---- RevIN normalization (per (batch, channel) row: mean/std over time) ---- #
    x = x_ref[...]                                           # (R, L) = (B*C, L), f32
    mean = jnp.mean(x, axis=-1, keepdims=True)               # (R, 1)
    xc = x - mean
    var = jnp.mean(xc * xc, axis=-1, keepdims=True)          # biased, torch default
    std = jnp.sqrt(var + 1e-5)
    xn = xc / std                                            # (R, L), f32

    # ---- Patching (ReplicationPad + unfold) + value embedding + pos embedding,
    #      pre-composed into one matmul; activation layout (R, P*D), p-major/d-minor. ----
    h = jnp.dot(xn.astype(jnp.bfloat16), wemb_ref[...],
                preferred_element_type=jnp.float32) + pos_ref[...]      # (R, P*D) f32

    mavg = mavg_ref[...]                                     # (PD, PD) block-avg, bf16
    for l in range(CFG.e_layers):
        # Pre-norm LayerNorm stats: two INDEPENDENT matmuls (E[x], E[x^2]) so they
        # pipeline through the MXU; var = E[x^2] - mu^2 (clamped, eps=1e-5).
        hb = h.astype(jnp.bfloat16)
        h2b = (h * h).astype(jnp.bfloat16)
        mu = jnp.dot(hb, mavg, preferred_element_type=jnp.float32)
        ex2 = jnp.dot(h2b, mavg, preferred_element_type=jnp.float32)
        varln = jnp.maximum(ex2 - mu * mu, 0.0)
        n = (h - mu) * jax.lax.rsqrt(varln + 1e-5)           # normalized (affine folded)

        # Depthwise causal SSM conv along the patch axis: block-Toeplitz weight with the
        # LayerNorm affine and the learned D-skip folded in (exact), + folded bias row.
        y = jnp.dot(n.astype(jnp.bfloat16), tconv_ref[l],
                    preferred_element_type=jnp.float32) + bconv_ref[l]

        # GELU (tanh approximation).  # TODO(synk): torch default is exact erf GELU.
        y = 0.5 * y * (1.0 + jnp.tanh(0.7978845608028654 * (y + 0.044715 * y * y * y)))

        # Position-wise output linear (H -> 2H) split into the two GLU halves
        # (kron(I_P, W_half) so it applies per patch token) -> gate -> residual.
        yb = y.astype(jnp.bfloat16)
        va = jnp.dot(yb, wa_ref[l], preferred_element_type=jnp.float32) + ba_ref[l]
        vb = jnp.dot(yb, wb_ref[l], preferred_element_type=jnp.float32) + bb_ref[l]
        gate = 0.5 * (1.0 + jnp.tanh(0.5 * vb))              # exact sigmoid, single EUP op
        h = va * gate + h                                    # dropout = identity (eval)

    # ---- FlattenHead (d-major flatten folded into the head-weight layout) ---- #
    dec = jnp.dot(h.astype(jnp.bfloat16), whead_ref[...],
                  preferred_element_type=jnp.float32) + bhead_ref[...]  # (R, pred)

    # ---- RevIN denormalization: single (B*C, pred) store ---- #
    o_ref[...] = dec * std + mean


def fused_forward(x_rows, p):
    R, L = x_rows.shape
    E = CFG.e_layers
    pred = CFG.pred_len
    c2 = lambda i: (0, 0)
    c3 = lambda i: (0, 0, 0)
    # Single fused step: at this problem size the kernel is latency-bound, so all
    # B*C rows are processed together (fills all 8 sublanes, one output store).
    return pl.pallas_call(
        _fused_forward_kernel,
        grid=(1,),
        in_specs=[
            pl.BlockSpec((R, L), c2),                        # x rows (B*C, L)
            pl.BlockSpec((L, PD), c2),                       # precomposed patch+embed (bf16)
            pl.BlockSpec((1, PD), c2),                       # positional embedding
            pl.BlockSpec((PD, PD), c2),                      # LayerNorm block-avg op (bf16)
            pl.BlockSpec((E, PD, PD), c3),                   # folded block-Toeplitz conv (bf16)
            pl.BlockSpec((E, 1, PD), c3),                    # folded conv bias row
            pl.BlockSpec((E, PD, PD), c3),                   # GLU half A weights (bf16)
            pl.BlockSpec((E, PD, PD), c3),                   # GLU half B weights (bf16)
            pl.BlockSpec((E, 1, PD), c3),                    # GLU half A bias
            pl.BlockSpec((E, 1, PD), c3),                    # GLU half B bias
            pl.BlockSpec((PD, pred), c2),                    # head weight (bf16)
            pl.BlockSpec((1, pred), c2),                     # head bias
        ],
        out_specs=pl.BlockSpec((R, pred), c2),
        out_shape=jax.ShapeDtypeStruct((R, pred), jnp.float32),
    )(x_rows, p["w_embed_full"], p["pos_flat"], p["m_avg"],
      p["t_conv"], p["b_conv"],
      p["w_glu_a"], p["w_glu_b"], p["b_glu_a"], p["b_glu_b"],
      p["w_head"], p["b_head"])


# ----------------------------- parameter glue (host-side, once) ------------ #
def sinusoidal_pos_embedding(P, D):
    pos = jnp.arange(P, dtype=jnp.float32)[:, None]
    div = jnp.exp(jnp.arange(0, D, 2, dtype=jnp.float32) * -(math.log(10000.0) / D))
    pe = jnp.zeros((P, D), jnp.float32)
    pe = pe.at[:, 0::2].set(jnp.sin(pos * div))
    pe = pe.at[:, 1::2].set(jnp.cos(pos * div))
    return pe


def s4d_conv_kernel(log_dt, c_re, c_im, L):
    """S4D diagonal SSM convolution kernel, returned as (L, H) (lag-major)."""
    H, N = c_re.shape
    dt = jnp.exp(log_dt)                                         # (H,)
    A = jnp.broadcast_to((-0.5 + 1j * jnp.pi * jnp.arange(N))[None, :], (H, N))
    C = c_re + 1j * c_im
    dtA = A * dt[:, None]
    expK = jnp.exp(dtA[:, :, None] * jnp.arange(L)[None, None, :])   # (H, N, L)
    Ck = C * (jnp.exp(dtA) - 1.0) / A
    k = 2.0 * jnp.real(jnp.einsum("hn,hnl->hl", Ck, expK)).astype(jnp.float32)  # (H, L)
    return k.T                                                   # (L, H)


def init_params(key):
    H, N, P, D = CFG.d_model, CFG.d_state, PATCH_NUM, CFG.d_model
    keys = jax.random.split(key, 4 + 6 * CFG.e_layers)
    it = iter(keys)

    # Value-embedding Linear(patch_len -> d_model) and sinusoidal position embedding.
    w_emb = jax.random.normal(next(it), (CFG.patch_len, D), jnp.float32) / math.sqrt(CFG.patch_len)
    pos = sinusoidal_pos_embedding(P, D)
    pos_flat = pos.reshape(1, PD)

    # Exact pre-composition of ReplicationPad1d((0, stride)) + unfold + value embedding
    # into one (L, P*D) matrix (patching is linear and commutes with the RevIN affine).
    w_embed_full = jnp.zeros((CFG.seq_len, PD), jnp.float32)
    for pp in range(P):
        for kk in range(CFG.patch_len):
            src = min(pp * CFG.stride + kk, CFG.seq_len - 1)     # replication pad
            w_embed_full = w_embed_full.at[src, pp * D:(pp + 1) * D].add(w_emb[kk])

    # Per-patch feature-mean operator for LayerNorm statistics (block-diagonal average).
    m_avg = jnp.kron(jnp.eye(P, dtype=jnp.float32), jnp.ones((D, D), jnp.float32) / D)

    tconvs, bconvs, was, wbs, bas, bbs = ([] for _ in range(6))
    eye_p = jnp.eye(P, dtype=jnp.float32)
    for _ in range(CFG.e_layers):
        log_dt = (jax.random.uniform(next(it), (H,), jnp.float32)
                  * (math.log(0.1) - math.log(0.001)) + math.log(0.001))
        c_re = jax.random.normal(next(it), (H, N), jnp.float32) * (0.5 ** 0.5)
        c_im = jax.random.normal(next(it), (H, N), jnp.float32) * (0.5 ** 0.5)
        k = s4d_conv_kernel(log_dt, c_re, c_im, P)               # (P, H)
        # Block-Toeplitz matrix implementing the depthwise causal conv along patches.
        t_big = jnp.zeros((PD, PD), jnp.float32)
        for j in range(P):
            t_big = t_big + jnp.kron(jnp.eye(P, k=j, dtype=jnp.float32), jnp.diag(k[j]))

        # Fold the LayerNorm affine (gamma=1, beta=0 at torch init) and the learned
        # D-skip into the conv weight, exactly:
        #   y = (n*gamma + beta) @ (T + diag(dskip))
        #     = n @ (diag(gamma) @ (T + diag(dskip))) + beta @ (T + diag(dskip))
        gamma_vec = jnp.tile(jnp.ones((H,), jnp.float32), P)     # (PD,)
        beta_vec = jnp.tile(jnp.zeros((H,), jnp.float32), P)     # (PD,)
        dskip_vec = jnp.tile(jax.random.normal(next(it), (H,), jnp.float32), P)
        t_aug = t_big + jnp.diag(dskip_vec)
        t_fold = gamma_vec[:, None] * t_aug                      # diag(gamma) @ t_aug
        b_fold = beta_vec[None, :] @ t_aug                       # (1, PD)

        w_out = jax.random.normal(next(it), (H, 2 * H), jnp.float32) / math.sqrt(H)
        b_out = jax.random.normal(next(it), (1, 2 * H), jnp.float32) * 0.01

        tconvs.append(t_fold.astype(jnp.bfloat16))
        bconvs.append(b_fold)
        was.append(jnp.kron(eye_p, w_out[:, :H]).astype(jnp.bfloat16))
        wbs.append(jnp.kron(eye_p, w_out[:, H:]).astype(jnp.bfloat16))
        bas.append(jnp.tile(b_out[:, :H], (1, P)))
        bbs.append(jnp.tile(b_out[:, H:], (1, P)))

    w_head = jax.random.normal(next(it), (HEAD_NF, CFG.pred_len),
                               jnp.float32) / math.sqrt(HEAD_NF)
    b_head = jax.random.normal(next(it), (1, CFG.pred_len), jnp.float32) * 0.01
    # FlattenHead flattens d-major ((D, P) -> D*P); permute rows to the kernel's
    # p-major/d-minor activation layout.
    w_head_perm = (w_head.reshape(D, P, CFG.pred_len)
                   .transpose(1, 0, 2).reshape(PD, CFG.pred_len))

    stack = lambda xs: jnp.stack(xs, axis=0)
    return dict(
        w_embed_full=w_embed_full.astype(jnp.bfloat16), pos_flat=pos_flat,
        m_avg=m_avg.astype(jnp.bfloat16),
        t_conv=stack(tconvs), b_conv=stack(bconvs),
        w_glu_a=stack(was), w_glu_b=stack(wbs), b_glu_a=stack(bas), b_glu_b=stack(bbs),
        w_head=w_head_perm.astype(jnp.bfloat16), b_head=b_head,
    )


# ----------------------------- forward pass -------------------------------- #
def model_forward(params, x_enc, x_mark_enc, x_dec, x_mark_dec):
    # x_mark_enc / x_dec / x_mark_dec unused in the forecast path (as in the reference).
    B, L, C = x_enc.shape
    # Fold batch and channel into sublane rows: (B, L, C) -> (B*C, L), tiny layout glue.
    x_rows = jnp.transpose(x_enc, (0, 2, 1)).reshape(B * C, L)
    dec = fused_forward(x_rows, params)                       # (B*C, pred_len), fully fused
    out = jnp.transpose(dec.reshape(B, C, CFG.pred_len), (0, 2, 1))   # (B, pred_len, C)
    return out[:, -CFG.pred_len:, :]


# ----------------------------- main ----------------------------------------- #
if __name__ == "__main__":
    key = jax.random.PRNGKey(0)
    kp, kx = jax.random.split(key)
    params = init_params(kp)

    B = 2
    x_enc = jax.random.normal(kx, (B, CFG.seq_len, CFG.enc_in), jnp.float32)
    x_mark_enc = jnp.zeros((B, CFG.seq_len, 4), jnp.float32)
    x_dec = jnp.zeros((B, CFG.pred_len, CFG.enc_in), jnp.float32)
    x_mark_dec = jnp.zeros((B, CFG.pred_len, 4), jnp.float32)

    fwd = jax.jit(model_forward)
    out = fwd(params, x_enc, x_mark_enc, x_dec, x_mark_dec)
    out = jax.block_until_ready(out)
    assert out.shape == (B, CFG.pred_len, CFG.enc_in), out.shape
    assert bool(jnp.all(jnp.isfinite(out)))
    print("KERNEL_OK")
</pallas_src>

<mosaic_0001>
module attributes {stable_mosaic.version = 11 : i64} {
  func.func @_fused_forward_kernel(%arg0: i32, %arg1: memref<8x16xf32, #tpu.memory_space<vmem>>, %arg2: memref<16x160xbf16, #tpu.memory_space<vmem>>, %arg3: memref<1x160xf32, #tpu.memory_space<vmem>>, %arg4: memref<160x160xbf16, #tpu.memory_space<vmem>>, %arg5: memref<2x160x160xbf16, #tpu.memory_space<vmem>>, %arg6: memref<2x1x160xf32, #tpu.memory_space<vmem>>, %arg7: memref<2x160x160xbf16, #tpu.memory_space<vmem>>, %arg8: memref<2x160x160xbf16, #tpu.memory_space<vmem>>, %arg9: memref<2x1x160xf32, #tpu.memory_space<vmem>>, %arg10: memref<2x1x160xf32, #tpu.memory_space<vmem>>, %arg11: memref<160x8xbf16, #tpu.memory_space<vmem>>, %arg12: memref<1x8xf32, #tpu.memory_space<vmem>>, %arg13: memref<8x8xf32, #tpu.memory_space<vmem>>) attributes {dimension_semantics = [#tpu.dimension_semantics<arbitrary>], iteration_bounds = array<i64: 1>, scalar_prefetch = 0 : i64, scratch_operands = 0 : i64, tpu.core_type = #tpu.core_type<tc>, window_params = [{pipeline_mode = #tpu.pipeline_mode<synchronous>, transform_indices = @transform_0, window_bounds = array<i64: 8, 16>}, {pipeline_mode = #tpu.pipeline_mode<synchronous>, transform_indices = @transform_1, window_bounds = array<i64: 16, 160>}, {pipeline_mode = #tpu.pipeline_mode<synchronous>, transform_indices = @transform_2, window_bounds = array<i64: 1, 160>}, {pipeline_mode = #tpu.pipeline_mode<synchronous>, transform_indices = @transform_3, window_bounds = array<i64: 160, 160>}, {pipeline_mode = #tpu.pipeline_mode<synchronous>, transform_indices = @transform_4, window_bounds = array<i64: 2, 160, 160>}, {pipeline_mode = #tpu.pipeline_mode<synchronous>, transform_indices = @transform_5, window_bounds = array<i64: 2, 1, 160>}, {pipeline_mode = #tpu.pipeline_mode<synchronous>, transform_indices = @transform_6, window_bounds = array<i64: 2, 160, 160>}, {pipeline_mode = #tpu.pipeline_mode<synchronous>, transform_indices = @transform_7, window_bounds = array<i64: 2, 160, 160>}, {pipeline_mode = #tpu.pipeline_mode<synchronous>, transform_indices = @transform_8, window_bounds = array<i64: 2, 1, 160>}, {pipeline_mode = #tpu.pipeline_mode<synchronous>, transform_indices = @transform_9, window_bounds = array<i64: 2, 1, 160>}, {pipeline_mode = #tpu.pipeline_mode<synchronous>, transform_indices = @transform_10, window_bounds = array<i64: 160, 8>}, {pipeline_mode = #tpu.pipeline_mode<synchronous>, transform_indices = @transform_11, window_bounds = array<i64: 1, 8>}, {pipeline_mode = #tpu.pipeline_mode<synchronous>, transform_indices = @transform_12, window_bounds = array<i64: 8, 8>}]} {
    %c0 = arith.constant 0 : index
    %c0_0 = arith.constant 0 : index
    %0 = vector.load %arg1[%c0, %c0_0] : memref<8x16xf32, #tpu.memory_space<vmem>>, vector<8x16xf32>
    %cst = arith.constant dense<0.000000e+00> : vector<8xf32>
    %1 = vector.multi_reduction <add>, %0, %cst [1] : vector<8x16xf32> to vector<8xf32>
    %2 = vector.shape_cast %1 : vector<8xf32> to vector<8x1xf32>
    %cst_1 = arith.constant 1.600000e+01 : f32
    %3 = vector.broadcast %cst_1 : f32 to vector<8x1xf32>
    %4 = arith.divf %2, %3 : vector<8x1xf32>
    %5 = vector.broadcast %4 : vector<8x1xf32> to vector<8x16xf32>
    %6 = arith.subf %0, %5 : vector<8x16xf32>
    %7 = arith.mulf %6, %6 : vector<8x16xf32>
    %cst_2 = arith.constant dense<0.000000e+00> : vector<8xf32>
    %8 = vector.multi_reduction <add>, %7, %cst_2 [1] : vector<8x16xf32> to vector<8xf32>
    %9 = vector.shape_cast %8 : vector<8xf32> to vector<8x1xf32>
    %cst_3 = arith.constant 1.600000e+01 : f32
    %10 = vector.broadcast %cst_3 : f32 to vector<8x1xf32>
    %11 = arith.divf %9, %10 : vector<8x1xf32>
    %cst_4 = arith.constant 9.99999974E-6 : f32
    %12 = vector.broadcast %cst_4 : f32 to vector<8x1xf32>
    %13 = arith.addf %11, %12 : vector<8x1xf32>
    %14 = math.sqrt %13 : vector<8x1xf32>
    %15 = vector.broadcast %14 : vector<8x1xf32> to vector<8x16xf32>
    %16 = arith.divf %6, %15 : vector<8x16xf32>
    %17 = arith.truncf %16 : vector<8x16xf32> to vector<8x16xbf16>
    %c0_5 = arith.constant 0 : index
    %c0_6 = arith.constant 0 : index
    %18 = vector.load %arg2[%c0_5, %c0_6] : memref<16x160xbf16, #tpu.memory_space<vmem>>, vector<16x160xbf16>
    %cst_7 = arith.constant dense<0.000000e+00> : vector<8x160xf32>
    %19 = tpu.matmul %17, %18, %cst_7 {dimension_numbers = #tpu.dot_dimension_numbers<[1], [0], [0], [1], [0, 0, 1, 1], [], []>} : vector<8x16xbf16>, vector<16x160xbf16>, vector<8x160xf32> -> vector<8x160xf32>
    %c0_8 = arith.constant 0 : index
    %c0_9 = arith.constant 0 : index
    %20 = vector.load %arg3[%c0_8, %c0_9] : memref<1x160xf32, #tpu.memory_space<vmem>>, vector<1x160xf32>
    %21 = vector.broadcast %20 : vector<1x160xf32> to vector<8x160xf32>
    %22 = arith.addf %19, %21 : vector<8x160xf32>
    %c0_10 = arith.constant 0 : index
    %c0_11 = arith.constant 0 : index
    %23 = vector.load %arg4[%c0_10, %c0_11] : memref<160x160xbf16, #tpu.memory_space<vmem>>, vector<160x160xbf16>
    %24 = arith.truncf %22 : vector<8x160xf32> to vector<8x160xbf16>
    %25 = arith.mulf %22, %22 : vector<8x160xf32>
    %26 = arith.truncf %25 : vector<8x160xf32> to vector<8x160xbf16>
    %cst_12 = arith.constant dense<0.000000e+00> : vector<8x160xf32>
    %27 = tpu.matmul %24, %23, %cst_12 {dimension_numbers = #tpu.dot_dimension_numbers<[1], [0], [0], [1], [0, 0, 1, 1], [], []>} : vector<8x160xbf16>, vector<160x160xbf16>, vector<8x160xf32> -> vector<8x160xf32>
    %cst_13 = arith.constant dense<0.000000e+00> : vector<8x160xf32>
    %28 = tpu.matmul %26, %23, %cst_13 {dimension_numbers = #tpu.dot_dimension_numbers<[1], [0], [0], [1], [0, 0, 1, 1], [], []>} : vector<8x160xbf16>, vector<160x160xbf16>, vector<8x160xf32> -> vector<8x160xf32>
    %29 = arith.mulf %27, %27 : vector<8x160xf32>
    %30 = arith.subf %28, %29 : vector<8x160xf32>
    %cst_14 = arith.constant 0.000000e+00 : f32
    %31 = vector.broadcast %cst_14 : f32 to vector<8x160xf32>
    %32 = arith.maximumf %30, %31 : vector<8x160xf32>
    %33 = arith.subf %22, %27 : vector<8x160xf32>
    %cst_15 = arith.constant 9.99999974E-6 : f32
    %34 = vector.broadcast %cst_15 : f32 to vector<8x160xf32>
    %35 = arith.addf %32, %34 : vector<8x160xf32>
    %36 = math.rsqrt %35 : vector<8x160xf32>
    %37 = arith.mulf %33, %36 : vector<8x160xf32>
    %38 = arith.truncf %37 : vector<8x160xf32> to vector<8x160xbf16>
    %c0_16 = arith.constant 0 : index
    %c0_17 = arith.constant 0 : index
    %c0_18 = arith.constant 0 : index
    %39 = vector.load %arg5[%c0_16, %c0_17, %c0_18] : memref<2x160x160xbf16, #tpu.memory_space<vmem>>, vector<1x160x160xbf16>
    %40 = vector.shape_cast %39 : vector<1x160x160xbf16> to vector<160x160xbf16>
    %cst_19 = arith.constant dense<0.000000e+00> : vector<8x160xf32>
    %41 = tpu.matmul %38, %40, %cst_19 {dimension_numbers = #tpu.dot_dimension_numbers<[1], [0], [0], [1], [0, 0, 1, 1], [], []>} : vector<8x160xbf16>, vector<160x160xbf16>, vector<8x160xf32> -> vector<8x160xf32>
    %c0_20 = arith.constant 0 : index
    %c0_21 = arith.constant 0 : index
    %c0_22 = arith.constant 0 : index
    %42 = vector.load %arg6[%c0_20, %c0_21, %c0_22] : memref<2x1x160xf32, #tpu.memory_space<vmem>>, vector<1x1x160xf32>
    %43 = vector.shape_cast %42 : vector<1x1x160xf32> to vector<1x160xf32>
    %44 = vector.broadcast %43 : vector<1x160xf32> to vector<8x160xf32>
    %45 = arith.addf %41, %44 : vector<8x160xf32>
    %cst_23 = arith.constant 5.000000e-01 : f32
    %46 = vector.broadcast %cst_23 : f32 to vector<8x160xf32>
    %47 = arith.mulf %46, %45 : vector<8x160xf32>
    %cst_24 = arith.constant 4.471500e-02 : f32
    %48 = vector.broadcast %cst_24 : f32 to vector<8x160xf32>
    %49 = arith.mulf %48, %45 : vector<8x160xf32>
    %50 = arith.mulf %49, %45 : vector<8x160xf32>
    %51 = arith.mulf %50, %45 : vector<8x160xf32>
    %52 = arith.addf %45, %51 : vector<8x160xf32>
    %cst_25 = arith.constant 0.797884583 : f32
    %53 = vector.broadcast %cst_25 : f32 to vector<8x160xf32>
    %54 = arith.mulf %53, %52 : vector<8x160xf32>
    %55 = math.tanh %54 : vector<8x160xf32>
    %cst_26 = arith.constant 1.000000e+00 : f32
    %56 = vector.broadcast %cst_26 : f32 to vector<8x160xf32>
    %57 = arith.addf %56, %55 : vector<8x160xf32>
    %58 = arith.mulf %47, %57 : vector<8x160xf32>
    %59 = arith.truncf %58 : vector<8x160xf32> to vector<8x160xbf16>
    %c0_27 = arith.constant 0 : index
    %c0_28 = arith.constant 0 : index
    %c0_29 = arith.constant 0 : index
    %60 = vector.load %arg7[%c0_27, %c0_28, %c0_29] : memref<2x160x160xbf16, #tpu.memory_space<vmem>>, vector<1x160x160xbf16>
    %61 = vector.shape_cast %60 : vector<1x160x160xbf16> to vector<160x160xbf16>
    %cst_30 = arith.constant dense<0.000000e+00> : vector<8x160xf32>
    %62 = tpu.matmul %59, %61, %cst_30 {dimension_numbers = #tpu.dot_dimension_numbers<[1], [0], [0], [1], [0, 0, 1, 1], [], []>} : vector<8x160xbf16>, vector<160x160xbf16>, vector<8x160xf32> -> vector<8x160xf32>
    %c0_31 = arith.constant 0 : index
    %c0_32 = arith.constant 0 : index
    %c0_33 = arith.constant 0 : index
    %63 = vector.load %arg9[%c0_31, %c0_32, %c0_33] : memref<2x1x160xf32, #tpu.memory_space<vmem>>, vector<1x1x160xf32>
    %64 = vector.shape_cast %63 : vector<1x1x160xf32> to vector<1x160xf32>
    %65 = vector.broadcast %64 : vector<1x160xf32> to vector<8x160xf32>
    %66 = arith.addf %62, %65 : vector<8x160xf32>
    %c0_34 = arith.constant 0 : index
    %c0_35 = arith.constant 0 : index
    %c0_36 = arith.constant 0 : index
    %67 = vector.load %arg8[%c0_34, %c0_35, %c0_36] : memref<2x160x160xbf16, #tpu.memory_space<vmem>>, vector<1x160x160xbf16>
    %68 = vector.shape_cast %67 : vector<1x160x160xbf16> to vector<160x160xbf16>
    %cst_37 = arith.constant dense<0.000000e+00> : vector<8x160xf32>
    %69 = tpu.matmul %59, %68, %cst_37 {dimension_numbers = #tpu.dot_dimension_numbers<[1], [0], [0], [1], [0, 0, 1, 1], [], []>} : vector<8x160xbf16>, vector<160x160xbf16>, vector<8x160xf32> -> vector<8x160xf32>
    %c0_38 = arith.constant 0 : index
    %c0_39 = arith.constant 0 : index
    %c0_40 = arith.constant 0 : index
    %70 = vector.load %arg10[%c0_38, %c0_39, %c0_40] : memref<2x1x160xf32, #tpu.memory_space<vmem>>, vector<1x1x160xf32>
    %71 = vector.shape_cast %70 : vector<1x1x160xf32> to vector<1x160xf32>
    %72 = vector.broadcast %71 : vector<1x160xf32> to vector<8x160xf32>
    %73 = arith.addf %69, %72 : vector<8x160xf32>
    %cst_41 = arith.constant 5.000000e-01 : f32
    %74 = vector.broadcast %cst_41 : f32 to vector<8x160xf32>
    %75 = arith.mulf %74, %73 : vector<8x160xf32>
    %76 = math.tanh %75 : vector<8x160xf32>
    %cst_42 = arith.constant 1.000000e+00 : f32
    %77 = vector.broadcast %cst_42 : f32 to vector<8x160xf32>
    %78 = arith.addf %77, %76 : vector<8x160xf32>
    %cst_43 = arith.constant 5.000000e-01 : f32
    %79 = vector.broadcast %cst_43 : f32 to vector<8x160xf32>
    %80 = arith.mulf %79, %78 : vector<8x160xf32>
    %81 = arith.mulf %66, %80 : vector<8x160xf32>
    %82 = arith.addf %81, %22 : vector<8x160xf32>
    %83 = arith.truncf %82 : vector<8x160xf32> to vector<8x160xbf16>
    %84 = arith.mulf %82, %82 : vector<8x160xf32>
    %85 = arith.truncf %84 : vector<8x160xf32> to vector<8x160xbf16>
    %cst_44 = arith.constant dense<0.000000e+00> : vector<8x160xf32>
    %86 = tpu.matmul %83, %23, %cst_44 {dimension_numbers = #tpu.dot_dimension_numbers<[1], [0], [0], [1], [0, 0, 1, 1], [], []>} : vector<8x160xbf16>, vector<160x160xbf16>, vector<8x160xf32> -> vector<8x160xf32>
    %cst_45 = arith.constant dense<0.000000e+00> : vector<8x160xf32>
    %87 = tpu.matmul %85, %23, %cst_45 {dimension_numbers = #tpu.dot_dimension_numbers<[1], [0], [0], [1], [0, 0, 1, 1], [], []>} : vector<8x160xbf16>, vector<160x160xbf16>, vector<8x160xf32> -> vector<8x160xf32>
    %88 = arith.mulf %86, %86 : vector<8x160xf32>
    %89 = arith.subf %87, %88 : vector<8x160xf32>
    %cst_46 = arith.constant 0.000000e+00 : f32
    %90 = vector.broadcast %cst_46 : f32 to vector<8x160xf32>
    %91 = arith.maximumf %89, %90 : vector<8x160xf32>
    %92 = arith.subf %82, %86 : vector<8x160xf32>
    %cst_47 = arith.constant 9.99999974E-6 : f32
    %93 = vector.broadcast %cst_47 : f32 to vector<8x160xf32>
    %94 = arith.addf %91, %93 : vector<8x160xf32>
    %95 = math.rsqrt %94 : vector<8x160xf32>
    %96 = arith.mulf %92, %95 : vector<8x160xf32>
    %97 = arith.truncf %96 : vector<8x160xf32> to vector<8x160xbf16>
    %c1 = arith.constant 1 : index
    %c0_48 = arith.constant 0 : index
    %c0_49 = arith.constant 0 : index
    %98 = vector.load %arg5[%c1, %c0_48, %c0_49] : memref<2x160x160xbf16, #tpu.memory_space<vmem>>, vector<1x160x160xbf16>
    %99 = vector.shape_cast %98 : vector<1x160x160xbf16> to vector<160x160xbf16>
    %cst_50 = arith.constant dense<0.000000e+00> : vector<8x160xf32>
    %100 = tpu.matmul %97, %99, %cst_50 {dimension_numbers = #tpu.dot_dimension_numbers<[1], [0], [0], [1], [0, 0, 1, 1], [], []>} : vector<8x160xbf16>, vector<160x160xbf16>, vector<8x160xf32> -> vector<8x160xf32>
    %c1_51 = arith.constant 1 : index
    %c0_52 = arith.constant 0 : index
    %c0_53 = arith.constant 0 : index
    %101 = vector.load %arg6[%c1_51, %c0_52, %c0_53] : memref<2x1x160xf32, #tpu.memory_space<vmem>>, vector<1x1x160xf32>
    %102 = vector.shape_cast %101 : vector<1x1x160xf32> to vector<1x160xf32>
    %103 = vector.broadcast %102 : vector<1x160xf32> to vector<8x160xf32>
    %104 = arith.addf %100, %103 : vector<8x160xf32>
    %cst_54 = arith.constant 5.000000e-01 : f32
    %105 = vector.broadcast %cst_54 : f32 to vector<8x160xf32>
    %106 = arith.mulf %105, %104 : vector<8x160xf32>
    %cst_55 = arith.constant 4.471500e-02 : f32
    %107 = vector.broadcast %cst_55 : f32 to vector<8x160xf32>
    %108 = arith.mulf %107, %104 : vector<8x160xf32>
    %109 = arith.mulf %108, %104 : vector<8x160xf32>
    %110 = arith.mulf %109, %104 : vector<8x160xf32>
    %111 = arith.addf %104, %110 : vector<8x160xf32>
    %cst_56 = arith.constant 0.797884583 : f32
    %112 = vector.broadcast %cst_56 : f32 to vector<8x160xf32>
    %113 = arith.mulf %112, %111 : vector<8x160xf32>
    %114 = math.tanh %113 : vector<8x160xf32>
    %cst_57 = arith.constant 1.000000e+00 : f32
    %115 = vector.broadcast %cst_57 : f32 to vector<8x160xf32>
    %116 = arith.addf %115, %114 : vector<8x160xf32>
    %117 = arith.mulf %106, %116 : vector<8x160xf32>
    %118 = arith.truncf %117 : vector<8x160xf32> to vector<8x160xbf16>
    %c1_58 = arith.constant 1 : index
    %c0_59 = arith.constant 0 : index
    %c0_60 = arith.constant 0 : index
    %119 = vector.load %arg7[%c1_58, %c0_59, %c0_60] : memref<2x160x160xbf16, #tpu.memory_space<vmem>>, vector<1x160x160xbf16>
    %120 = vector.shape_cast %119 : vector<1x160x160xbf16> to vector<160x160xbf16>
    %cst_61 = arith.constant dense<0.000000e+00> : vector<8x160xf32>
    %121 = tpu.matmul %118, %120, %cst_61 {dimension_numbers = #tpu.dot_dimension_numbers<[1], [0], [0], [1], [0, 0, 1, 1], [], []>} : vector<8x160xbf16>, vector<160x160xbf16>, vector<8x160xf32> -> vector<8x160xf32>
    %c1_62 = arith.constant 1 : index
    %c0_63 = arith.constant 0 : index
    %c0_64 = arith.constant 0 : index
    %122 = vector.load %arg9[%c1_62, %c0_63, %c0_64] : memref<2x1x160xf32, #tpu.memory_space<vmem>>, vector<1x1x160xf32>
    %123 = vector.shape_cast %122 : vector<1x1x160xf32> to vector<1x160xf32>
    %124 = vector.broadcast %123 : vector<1x160xf32> to vector<8x160xf32>
    %125 = arith.addf %121, %124 : vector<8x160xf32>
    %c1_65 = arith.constant 1 : index
    %c0_66 = arith.constant 0 : index
    %c0_67 = arith.constant 0 : index
    %126 = vector.load %arg8[%c1_65, %c0_66, %c0_67] : memref<2x160x160xbf16, #tpu.memory_space<vmem>>, vector<1x160x160xbf16>
    %127 = vector.shape_cast %126 : vector<1x160x160xbf16> to vector<160x160xbf16>
    %cst_68 = arith.constant dense<0.000000e+00> : vector<8x160xf32>
    %128 = tpu.matmul %118, %127, %cst_68 {dimension_numbers = #tpu.dot_dimension_numbers<[1], [0], [0], [1], [0, 0, 1, 1], [], []>} : vector<8x160xbf16>, vector<160x160xbf16>, vector<8x160xf32> -> vector<8x160xf32>
    %c1_69 = arith.constant 1 : index
    %c0_70 = arith.constant 0 : index
    %c0_71 = arith.constant 0 : index
    %129 = vector.load %arg10[%c1_69, %c0_70, %c0_71] : memref<2x1x160xf32, #tpu.memory_space<vmem>>, vector<1x1x160xf32>
    %130 = vector.shape_cast %129 : vector<1x1x160xf32> to vector<1x160xf32>
    %131 = vector.broadcast %130 : vector<1x160xf32> to vector<8x160xf32>
    %132 = arith.addf %128, %131 : vector<8x160xf32>
    %cst_72 = arith.constant 5.000000e-01 : f32
    %133 = vector.broadcast %cst_72 : f32 to vector<8x160xf32>
    %134 = arith.mulf %133, %132 : vector<8x160xf32>
    %135 = math.tanh %134 : vector<8x160xf32>
    %cst_73 = arith.constant 1.000000e+00 : f32
    %136 = vector.broadcast %cst_73 : f32 to vector<8x160xf32>
    %137 = arith.addf %136, %135 : vector<8x160xf32>
    %cst_74 = arith.constant 5.000000e-01 : f32
    %138 = vector.broadcast %cst_74 : f32 to vector<8x160xf32>
    %139 = arith.mulf %138, %137 : vector<8x160xf32>
    %140 = arith.mulf %125, %139 : vector<8x160xf32>
    %141 = arith.addf %140, %82 : vector<8x160xf32>
    %142 = arith.truncf %141 : vector<8x160xf32> to vector<8x160xbf16>
    %c0_75 = arith.constant 0 : index
    %c0_76 = arith.constant 0 : index
    %143 = vector.load %arg11[%c0_75, %c0_76] : memref<160x8xbf16, #tpu.memory_space<vmem>>, vector<160x8xbf16>
    %cst_77 = arith.constant dense<0.000000e+00> : vector<8x8xf32>
    %144 = tpu.matmul %142, %143, %cst_77 {dimension_numbers = #tpu.dot_dimension_numbers<[1], [0], [0], [1], [0, 0, 1, 1], [], []>} : vector<8x160xbf16>, vector<160x8xbf16>, vector<8x8xf32> -> vector<8x8xf32>
    %c0_78 = arith.constant 0 : index
    %c0_79 = arith.constant 0 : index
    %145 = vector.load %arg12[%c0_78, %c0_79] : memref<1x8xf32, #tpu.memory_space<vmem>>, vector<1x8xf32>
    %146 = vector.broadcast %145 : vector<1x8xf32> to vector<8x8xf32>
    %147 = arith.addf %144, %146 : vector<8x8xf32>
    %148 = vector.broadcast %14 : vector<8x1xf32> to vector<8x8xf32>
    %149 = arith.mulf %147, %148 : vector<8x8xf32>
    %150 = vector.broadcast %4 : vector<8x1xf32> to vector<8x8xf32>
    %151 = arith.addf %149, %150 : vector<8x8xf32>
    %c0_80 = arith.constant 0 : index
    %c0_81 = arith.constant 0 : index
    %152 = vector.load %arg13[%c0_80, %c0_81] : memref<8x8xf32, #tpu.memory_space<vmem>>, vector<8x8xf32>
    tpu.vector_store %arg13[%c0_80, %c0_81], %151 {strides = array<i32>} : memref<8x8xf32, #tpu.memory_space<vmem>>, vector<8x8xf32>,
    return
  }
  func.func @transform_0(%arg0: i32) -> (i32, i32) {
    %c0_i32 = arith.constant 0 : i32
    %c0_i32_0 = arith.constant 0 : i32
    %c0_i32_1 = arith.constant 0 : i32
    return %c0_i32, %c0_i32_0 : i32, i32
  }
  func.func @transform_1(%arg0: i32) -> (i32, i32) {
    %c0_i32 = arith.constant 0 : i32
    %c0_i32_0 = arith.constant 0 : i32
    %c0_i32_1 = arith.constant 0 : i32
    return %c0_i32, %c0_i32_0 : i32, i32
  }
  func.func @transform_2(%arg0: i32) -> (i32, i32) {
    %c0_i32 = arith.constant 0 : i32
    %c0_i32_0 = arith.constant 0 : i32
    %c0_i32_1 = arith.constant 0 : i32
    return %c0_i32, %c0_i32_0 : i32, i32
  }
  func.func @transform_3(%arg0: i32) -> (i32, i32) {
    %c0_i32 = arith.constant 0 : i32
    %c0_i32_0 = arith.constant 0 : i32
    %c0_i32_1 = arith.constant 0 : i32
    return %c0_i32, %c0_i32_0 : i32, i32
  }
  func.func @transform_4(%arg0: i32) -> (i32, i32, i32) {
    %c0_i32 = arith.constant 0 : i32
    %c0_i32_0 = arith.constant 0 : i32
    %c0_i32_1 = arith.constant 0 : i32
    %c0_i32_2 = arith.constant 0 : i32
    return %c0_i32, %c0_i32_0, %c0_i32_1 : i32, i32, i32
  }
  func.func @transform_5(%arg0: i32) -> (i32, i32, i32) {
    %c0_i32 = arith.constant 0 : i32
    %c0_i32_0 = arith.constant 0 : i32
    %c0_i32_1 = arith.constant 0 : i32
    %c0_i32_2 = arith.constant 0 : i32
    return %c0_i32, %c0_i32_0, %c0_i32_1 : i32, i32, i32
  }
  func.func @transform_6(%arg0: i32) -> (i32, i32, i32) {
    %c0_i32 = arith.constant 0 : i32
    %c0_i32_0 = arith.constant 0 : i32
    %c0_i32_1 = arith.constant 0 : i32
    %c0_i32_2 = arith.constant 0 : i32
    return %c0_i32, %c0_i32_0, %c0_i32_1 : i32, i32, i32
  }
  func.func @transform_7(%arg0: i32) -> (i32, i32, i32) {
    %c0_i32 = arith.constant 0 : i32
    %c0_i32_0 = arith.constant 0 : i32
    %c0_i32_1 = arith.constant 0 : i32
    %c0_i32_2 = arith.constant 0 : i32
    return %c0_i32, %c0_i32_0, %c0_i32_1 : i32, i32, i32
  }
  func.func @transform_8(%arg0: i32) -> (i32, i32, i32) {
    %c0_i32 = arith.constant 0 : i32
    %c0_i32_0 = arith.constant 0 : i32
    %c0_i32_1 = arith.constant 0 : i32
    %c0_i32_2 = arith.constant 0 : i32
    return %c0_i32, %c0_i32_0, %c0_i32_1 : i32, i32, i32
  }
  func.func @transform_9(%arg0: i32) -> (i32, i32, i32) {
    %c0_i32 = arith.constant 0 : i32
    %c0_i32_0 = arith.constant 0 : i32
    %c0_i32_1 = arith.constant 0 : i32
    %c0_i32_2 = arith.constant 0 : i32
    return %c0_i32, %c0_i32_0, %c0_i32_1 : i32, i32, i32
  }
  func.func @transform_10(%arg0: i32) -> (i32, i32) {
    %c0_i32 = arith.constant 0 : i32
    %c0_i32_0 = arith.constant 0 : i32
    %c0_i32_1 = arith.constant 0 : i32
    return %c0_i32, %c0_i32_0 : i32, i32
  }
  func.func @transform_11(%arg0: i32) -> (i32, i32) {
    %c0_i32 = arith.constant 0 : i32
    %c0_i32_0 = arith.constant 0 : i32
    %c0_i32_1 = arith.constant 0 : i32
    return %c0_i32, %c0_i32_0 : i32, i32
  }
  func.func @transform_12(%arg0: i32) -> (i32, i32) {
    %c0_i32 = arith.constant 0 : i32
    %c0_i32_0 = arith.constant 0 : i32
    %c0_i32_1 = arith.constant 0 : i32
    return %c0_i32, %c0_i32_0 : i32, i32
  }
}

</mosaic_0001>

<bundles_post_ra>
// kernel: model_forward.1
= control target key start
LH: loop header
LB: loop body
LE: loop exit
PB: predicated region body
PF: predicated region fallthrough
CT: control target
= control target key end

     0   :  { %17 = vsyncpa [#allocation3], 0  ;;  %s2705_s0 = inlined_call_operand.vmem [shape: f32[8,16], index: 0, kind: input, shape index: {}]   ;;  %s2706_s1 = inlined_call_operand.vmem [shape: bf16[16,160], index: 1, kind: input, shape index: {}]   ;;  %s2707_s2 = inlined_call_operand.vmem [shape: f32[1,160], index: 2, kind: input, shape index: {}]   ;;  %s2708_s3 = inlined_call_operand.hbm [shape: bf16[160,160], index: 3, kind: input, shape index: {}]   ;;  %s2709_s4 = inlined_call_operand.hbm [shape: bf16[2,160,160], index: 4, kind: input, shape index: {}]   ;;  %s2710_s5 = inlined_call_operand.vmem [shape: f32[2,1,160], index: 5, kind: input, shape index: {}]   ;;  %s2711_s6 = inlined_call_operand.hbm [shape: bf16[2,160,160], index: 6, kind: input, shape index: {}]   ;;  %s2712_s7 = inlined_call_operand.hbm [shape: bf16[2,160,160], index: 7, kind: input, shape index: {}]   ;;  %s2713_s8 = inlined_call_operand.vmem [shape: f32[2,1,160], index: 8, kind: input, shape index: {}]   ;;  %s2714_s9 = inlined_call_operand.vmem [shape: f32[2,1,160], index: 9, kind: input, shape index: {}]   ;;  %s2715_s10 = inlined_call_operand.vmem [shape: bf16[160,8], index: 10, kind: input, shape index: {}]   ;;  %s2716_s11 = inlined_call_operand.vmem [shape: f32[1,8], index: 11, kind: input, shape index: {}]   ;;  %s2717_s12 = inlined_call_operand.hbm [shape: f32[8,8], index: 12, kind: output, shape index: {}]  }
   0x1   :  { %18 = vsyncpa [#allocation6], 0 }
   0x2   :  { %19 = vsyncpa [#allocation9], 0 }
   0x3   :  { %20 = vsyncpa [#allocation4], 0  ;;  %s2339_s21 = smov [#allocation5]   ;;  %s2340_s23 = smov [#allocation2]  }
   0x4   :  { %s44_s22 = sshll.u32 %s2339_s21, 4  ;;  %s32_s24 = sshll.u32 %s2340_s23, 4  ;;  %s45_s22 = int_to_ptr.vmem [resolvable:$true] %s44_s22  ;;  %s33_s24 = int_to_ptr.vmem [resolvable:$true] %s32_s24 }
   0x5   :  { %s2239_s25 = scalar_lea.vmem %s45_s22, 5120  ;;  %p2244_p1 = scmp.lt.s32.totalorder %s45_s22, %s45_s22 }
   0x6   :  { %p2240_p0 = scmp.ne.s32.totalorder %s45_s22, %s2239_s25  ;;  %p2245_p2 = scmp.lt.s32.totalorder %s2239_s25, %s2239_s25 }
   0x8   :  { %p2246_p3 = por %p2245_p2, %p2244_p1 }
   0xa   :  { %p2247_p4 = pnand %p2246_p3, %p2240_p0 }
   0xc   :  { %2250 = shalt.err (!%p2247_p4)
}
   0xd   :  { %s2341_s26 = smov 128   ;;  %s2342_s27 = smov 8  }
   0xe   :  { %50 = dma.hbm_to_vmem [thread:$0]  %s2709_s4, 5120, %s45_s22, [#allocation6], %s2341_s26, %s2341_s26, %s2342_s27  }
   0xf   :  { %s2259_s30 = scalar_lea.vmem %s33_s24, 2560  ;;  %p2264_p6 = scmp.lt.s32.totalorder %s33_s24, %s33_s24 }
  0x10   :  { %p2260_p5 = scmp.ne.s32.totalorder %s33_s24, %s2259_s30  ;;  %p2265_p7 = scmp.lt.s32.totalorder %s2259_s30, %s2259_s30 }
  0x12   :  { %p2266_p8 = por %p2265_p7, %p2264_p6 }
  0x14   :  { %p2267_p9 = pnand %p2266_p8, %p2260_p5 }
  0x16   :  { %2270 = shalt.err (!%p2267_p9)
}
  0x17   :  { %38 = dma.hbm_to_vmem [thread:$0]  %s2708_s3, 2560, %s33_s24, [#allocation3], %s2341_s26, %s2341_s26, %s2342_s27  }
  0x18   :  { %s2343_s15 = smov [#allocation7]   ;;  %s2344_s17 = smov [#allocation8]  }
  0x19   :  { %s58_s16 = sshll.u32 %s2343_s15, 4  ;;  %s70_s18 = sshll.u32 %s2344_s17, 4  ;;  %s59_s16 = int_to_ptr.vmem [resolvable:$true] %s58_s16  ;;  %s71_s18 = int_to_ptr.vmem [resolvable:$true] %s70_s18 }
  0x1a   :  { %s2279_s4 = scalar_lea.vmem %s59_s16, 5120  ;;  %p2284_p11 = scmp.lt.s32.totalorder %s59_s16, %s59_s16 }
  0x1b   :  { %p2280_p10 = scmp.ne.s32.totalorder %s59_s16, %s2279_s4  ;;  %p2285_p12 = scmp.lt.s32.totalorder %s2279_s4, %s2279_s4 }
  0x1d   :  { %p2286_p13 = por %p2285_p12, %p2284_p11 }
  0x1f   :  { %p2287_p0 = pnand %p2286_p13, %p2280_p10 }
  0x21   :  { %2290 = shalt.err (!%p2287_p0)
}
  0x22   :  { %64 = dma.hbm_to_vmem [thread:$0]  %s2711_s6, 5120, %s59_s16, [#allocation6], %s2341_s26, %s2341_s26, %s2342_s27  }
  0x23   :  { %s2299_s3 = scalar_lea.vmem %s71_s18, 5120  ;;  %p2304_p2 = scmp.lt.s32.totalorder %s71_s18, %s71_s18 }
  0x24   :  { %p2300_p1 = scmp.ne.s32.totalorder %s71_s18, %s2299_s3  ;;  %p2305_p3 = scmp.lt.s32.totalorder %s2299_s3, %s2299_s3 }
  0x26   :  { %p2306_p4 = por %p2305_p3, %p2304_p2 }
  0x28   :  { %p2307_p5 = pnand %p2306_p4, %p2300_p1 }
  0x2a   :  { %2310 = shalt.err (!%p2307_p5)
}
  0x2b   :  { %76 = dma.hbm_to_vmem [thread:$0]  %s2712_s7, 5120, %s71_s18, [#allocation9], %s2341_s26, %s2341_s26, %s2342_s27  }
  0x2c   :  { %2331 = dma.done.wait [#allocation3], 2560  }
  0x2d   :  { %2332 = vsyncadd [#allocation3], 4294964736 }
  0x2e   :  { %2333 = dma.done.wait [#allocation6], 10240  }
  0x2f   :  { %2334 = vsyncadd [#allocation6], 4294957056 }
  0x30   :  { %2335 = dma.done.wait [#allocation9], 5120  }
  0x31   :  { %2336 = vsyncadd [#allocation9], 4294962176  ;;  %vm99_vm0 = vcmask 130048   ;;  %v98_v0 = vld [vmem:[%s2705_s0] sm:$0xff]  ;;  %v2345_v9 = vmov 0   ;;  %v126_v42 = vlaneseq  ;;  %vm316_vm3 = vcmask 261120  }
  0x32   :  { %v100_v1 = vsel %vm99_vm0, %v98_v0, 0.0  ;;  %v1980_v7 = vld [vmem:[%s2706_s1 + $0x4] ss:$8 sps:$4 sm:$0xff]   ;;  %v1982_v8 = vld [vmem:[%s2706_s1] ss:$8 sps:$4 sm:$0xff]   ;;  %181 = vmatprep.mubr.bf16.mxu0 %v2345_v9  ;;  %s2346_s13 = smov [#allocation10]  }
  0x33   :  { %101 = vadd.xlane.f32.xlu0 %v100_v1  ;;  %163 = vmatprep.subr.bf16.mxu0 %v1980_v7  ;;  %v2451_v10 = vld [vmem:[#allocation2 + $0x74] ss:$8 sps:$4 sm:$0xff]   ;;  %v2453_v11 = vld [vmem:[#allocation2 + $0x70] ss:$8 sps:$4 sm:$0xff]   ;;  %v2455_v12 = vld [vmem:[#allocation2 + $0x64] ss:$8 sps:$4 sm:$0xff]  }
  0x34   :  { %164 = vmatpush1.bf16.msra.mxu0 %v1982_v8  ;;  %320 = vmatprep.subr.bf16.mxu1 %v2451_v10  ;;  %v2460_v13 = vld [vmem:[#allocation2 + $0x60] ss:$8 sps:$4 sm:$0xff]   ;;  %v2463_v14 = vld [vmem:[#allocation2 + $0x54] ss:$8 sps:$4 sm:$0xff]   ;;  %v2466_v15 = vld [vmem:[#allocation2 + $0x50] ss:$8 sps:$4 sm:$0xff]  }
  0x35   :  { %364 = vmatprep.subr.bf16.mxu0 %v2451_v10  ;;  %321 = vmatpush1.bf16.msra.mxu1 %v2453_v11  ;;  %v2469_v16 = vld [vmem:[#allocation2 + $0x44] ss:$8 sps:$4 sm:$0xff]   ;;  %v2472_v17 = vld [vmem:[#allocation2 + $0x40] ss:$8 sps:$4 sm:$0xff]   ;;  %v2475_v18 = vld [vmem:[#allocation2 + $0x34] ss:$8 sps:$4 sm:$0xff]  }
  0x36   :  { %322 = vmatprep.subr.bf16.mxu1 %v2455_v12  ;;  %v2478_v19 = vld [vmem:[#allocation2 + $0x30] ss:$8 sps:$4 sm:$0xff]   ;;  %v2481_v20 = vld [vmem:[#allocation2 + $0x24] ss:$8 sps:$4 sm:$0xff]   ;;  %v2484_v21 = vld [vmem:[#allocation2 + $0x20] ss:$8 sps:$4 sm:$0xff]  }
  0x37   :  { %v2487_v22 = vld [vmem:[#allocation2 + $0x14] ss:$8 sps:$4 sm:$0xff]   ;;  %v2490_v23 = vld [vmem:[#allocation2 + $0x10] ss:$8 sps:$4 sm:$0xff]   ;;  %v2493_v24 = vld [vmem:[#allocation2 + $0x4] ss:$8 sps:$4 sm:$0xff]  }
  0x38   :  { %v2496_v25 = vld [vmem:[#allocation2] ss:$8 sps:$4 sm:$0xff]   ;;  %v2519_v37 = vld [vmem:[#allocation2 + $0x94] ss:$8 sps:$4 sm:$0xff]   ;;  %v2521_v38 = vld [vmem:[#allocation2 + $0x90] ss:$8 sps:$4 sm:$0xff]  }
  0x39   :  { %323 = vmatpush1.bf16.msra.mxu1 %v2460_v13  ;;  %v2527_v39 = vld [vmem:[#allocation2 + $0x84] ss:$8 sps:$4 sm:$0xff]   ;;  %v2529_v40 = vld [vmem:[#allocation2 + $0x80] ss:$8 sps:$4 sm:$0xff]   ;;  %v2015_v41 = vld [vmem:[#allocation5 + $0x74] ss:$8 sps:$4 sm:$0xff]  }
  0x3a   :  { %324 = vmatprep.subr.bf16.mxu1 %v2463_v14  ;;  %v127_v43 = vshrl.u32 %v126_v42, 7  ;;  %v124_v45 = vld [vmem:[%s2707_s2] sm:$0x3]  ;;  %v2013_v57 = vld [vmem:[#allocation5 + $0x70] ss:$8 sps:$4 sm:$0xff]   ;;  %s1793_s14 = sshll.u32 %s2346_s13, 4  ;;  %s1794_s14 = int_to_ptr.vmem [resolvable:$true] %s1793_s14 }
  0x3b   :  { %v2018_v60 = vld [vmem:[#allocation5 + $0x64] ss:$8 sps:$4 sm:$0xff]   ;;  %v2016_v63 = vld [vmem:[#allocation5 + $0x60] ss:$8 sps:$4 sm:$0xff]   ;;  %v2019_v1 = vld [vmem:[#allocation5 + $0x50] ss:$8 sps:$4 sm:$0xff]   ;;  %p2316_p7 = scmp.lt.s32.totalorder %s1794_s14, %s1794_s14 }
  0x3c   :  { %v2535_v44 = vsub.s32 0, %v127_v43  ;;  %v2540_v46 = vsub.s32 1, %v127_v43  ;;  %v2030_v7 = vld [vmem:[#allocation5 + $0x24] ss:$8 sps:$4 sm:$0xff]   ;;  %v2028_v8 = vld [vmem:[#allocation5 + $0x20] ss:$8 sps:$4 sm:$0xff]  }
  0x3d   :  { %325 = vmatpush1.bf16.msra.mxu1 %v2466_v15  ;;  %vm1785_vm4 = vcmask 64512   ;;  %s2311_s15 = scalar_lea.vmem %s1794_s14, 128 }
  0x3e   :  { %326 = vmatprep.subr.bf16.mxu1 %v2469_v16  ;;  %v129_v47 = vrot.slane %v124_v45, %v2535_v44  ;;  %v133_v48 = vrot.slane %v124_v45, %v2540_v46  ;;  %p2312_p6 = scmp.ne.s32.totalorder %s1794_s14, %s2311_s15  ;;  %p2317_p8 = scmp.lt.s32.totalorder %s2311_s15, %s2311_s15 }
  0x40   :  { %p2318_p9 = por %p2317_p8, %p2316_p7 }
  0x41   :  { %327 = vmatpush1.bf16.msra.mxu1 %v2472_v17 }
  0x42   :  { %328 = vmatprep.subr.bf16.mxu1 %v2475_v18  ;;  %p2319_p10 = pnand %p2318_p9, %p2312_p6 }
  0x45   :  { %329 = vmatpush1.bf16.msra.mxu1 %v2478_v19 }
  0x46   :  { %330 = vmatprep.subr.bf16.mxu1 %v2481_v20 }
  0x49   :  { %331 = vmatpush1.bf16.msra.mxu1 %v2484_v21 }
  0x4a   :  { %332 = vmatprep.subr.bf16.mxu1 %v2487_v22 }
  0x4d   :  { %333 = vmatpush1.bf16.msra.mxu1 %v2490_v23 }
  0x4e   :  { %334 = vmatprep.subr.bf16.mxu1 %v2493_v24 }
  0x51   :  { %335 = vmatpush1.bf16.msra.mxu1 %v2496_v25 }
  0x52   :  { %348 = vmatprep.subr.bf16.mxu1 %v2519_v37 }
  0x55   :  { %349 = vmatpush2.bf16.msra.mxu1 %v2521_v38 }
  0x56   :  { %350 = vmatprep.subr.bf16.mxu1 %v2527_v39 }
  0x59   :  { %351 = vmatpush2.bf16.msra.mxu1 %v2529_v40 }
  0x5a   :  { %556 = vmatprep.subr.bf16.mxu1 %v2015_v41  ;;  %v2048_v41 = vld [vmem:[#allocation8 + $0x74] ss:$8 sps:$4 sm:$0xff]  }
  0xbc   :  { %v102_v2 = vpop.xlane.xlu0 %101 }
  0xbd   :  { %v2440_v3 = vmul.f32 0.0625, %v102_v2  ;;  %v2024_v2 = vld [vmem:[#allocation5 + $0x44] ss:$8 sps:$4 sm:$0xff]  }
  0xbf   :  { %v105_v4 = vsub.f32 %v98_v0, %v2440_v3  ;;  %v2021_v0 = vld [vmem:[#allocation5 + $0x54] ss:$8 sps:$4 sm:$0xff]  }
  0xc1   :  { %v106_v5 = vmul.f32 %v105_v4, %v105_v4 }
  0xc3   :  { %v107_v6 = vsel %vm99_vm0, %v106_v5, 0.0  ;;  %v2027_v5 = vld [vmem:[#allocation5 + $0x34] ss:$8 sps:$4 sm:$0xff]  }
  0xc4   :  { %108 = vadd.xlane.f32.xlu0 %v107_v6  ;;  %v2025_v6 = vld [vmem:[#allocation5 + $0x30] ss:$8 sps:$4 sm:$0xff]  }
 0x14d   :  { %v109_v26 = vpop.xlane.xlu0 %108 }
 0x14e   :  { %v110_v27 = vmul.f32 0.0625, %v109_v26  ;;  %v2031_v26 = vld [vmem:[#allocation5 + $0x10] ss:$8 sps:$4 sm:$0xff]  }
 0x150   :  { %v111_v28 = vadd.f32 1e-05, %v110_v27  ;;  %v2033_v27 = vld [vmem:[#allocation5 + $0x14] ss:$8 sps:$4 sm:$0xff]  }
 0x152   :  { %2203 = vrsqrt.f32 %v111_v28  ;;  %vm114_vm1 = vcmp.eq.f32.partialorder %v111_v28, inf  ;;  %v117_v31 = vand.u32 2147483648, %v111_v28  ;;  %vm116_vm2 = vcmp.eq.f32.partialorder %v111_v28, 0.0 }
 0x15f   :  { %v2204_v29 = vpop.eup %2203 }
 0x160   :  { %v113_v30 = vmul.f32 %v2204_v29, %v111_v28  ;;  %v2034_v29 = vld [vmem:[#allocation5] ss:$8 sps:$4 sm:$0xff]  }
 0x162   :  { %v115_v32 = vsel %vm114_vm1, %v111_v28, %v113_v30  ;;  %v2036_v28 = vld [vmem:[#allocation5 + $0x4] ss:$8 sps:$4 sm:$0xff]   ;;  %v2039_v30 = vld [vmem:[#allocation5 + $0x94] ss:$8 sps:$4 sm:$0xff]  }
 0x163   :  { %v2500_v33 = vsel %vm116_vm2, %v117_v31, %v115_v32  ;;  %v2037_v31 = vld [vmem:[#allocation5 + $0x90] ss:$8 sps:$4 sm:$0xff]   ;;  %v2042_v32 = vld [vmem:[#allocation5 + $0x84] ss:$8 sps:$4 sm:$0xff]  }
 0x164   :  { %2205 = vrcp.f32 %v2500_v33 }
 0x171   :  { %v2206_v34 = vpop.eup %2205 }
 0x172   :  { %v120_v35 = vmul.f32 %v2206_v34, %v105_v4  ;;  %v2022_v4 = vld [vmem:[#allocation5 + $0x40] ss:$8 sps:$4 sm:$0xff]  }
 0x173   :  { %v2040_v34 = vld [vmem:[#allocation5 + $0x80] ss:$8 sps:$4 sm:$0xff]  }
 0x174   :  { %v121_v36 = vpack.c.bf16 %v120_v35, %v120_v35  ;;  %v2043_v35 = vld [vmem:[#allocation7 + $0x70] ss:$8 sps:$4 sm:$0xff]  }
 0x176   :  { %1806 = vmatmul.mubr.msk.bf16.vlgmr.msra.gmra.mxu0 %vm99_vm0, %v121_v36  ;;  %v2045_v36 = vld [vmem:[#allocation7 + $0x74] ss:$8 sps:$4 sm:$0xff]  }
 0x177   :  { %365 = vmatpush1.bf16.msra.mxu0 %v2453_v11 }
 0x178   :  { %366 = vmatprep.subr.bf16.mxu0 %v2455_v12 }
 0x17b   :  { %367 = vmatpush1.bf16.msra.mxu0 %v2460_v13 }
 0x17c   :  { %368 = vmatprep.subr.bf16.mxu0 %v2463_v14 }
 0x17f   :  { %369 = vmatpush1.bf16.msra.mxu0 %v2466_v15 }
 0x180   :  { %370 = vmatprep.subr.bf16.mxu0 %v2469_v16 }
 0x183   :  { %371 = vmatpush1.bf16.msra.mxu0 %v2472_v17 }
 0x184   :  { %372 = vmatprep.subr.bf16.mxu0 %v2475_v18 }
 0x187   :  { %373 = vmatpush1.bf16.msra.mxu0 %v2478_v19 }
 0x188   :  { %374 = vmatprep.subr.bf16.mxu0 %v2481_v20 }
 0x18b   :  { %375 = vmatpush1.bf16.msra.mxu0 %v2484_v21 }
 0x18c   :  { %376 = vmatprep.subr.bf16.mxu0 %v2487_v22 }
 0x18f   :  { %377 = vmatpush1.bf16.msra.mxu0 %v2490_v23 }
 0x190   :  { %378 = vmatprep.subr.bf16.mxu0 %v2493_v24 }
 0x193   :  { %379 = vmatpush1.bf16.msra.mxu0 %v2496_v25 }
 0x194   :  { %392 = vmatprep.subr.bf16.mxu0 %v2519_v37 }
 0x197   :  { %393 = vmatpush2.bf16.msra.mxu0 %v2521_v38 }
 0x198   :  { %394 = vmatprep.subr.bf16.mxu0 %v2527_v39 }
 0x19b   :  { %395 = vmatpush2.bf16.msra.mxu0 %v2529_v40 }
 0x19c   :  { %752 = vmatprep.subr.bf16.mxu0 %v2045_v36  ;;  %v2061_v36 = vld [vmem:[#allocation7 + $0x40] ss:$8 sps:$4 sm:$0xff]  }
 0x236   :  { %v183_v49 = vpop.f32.mrf.mxu0 }
 0x237   :  { %v2544_v50 = vadd.f32 %v183_v49, %v129_v47 }
 0x238   :  { %v185_v51 = vpop.f32.mrf.mxu0 }
 0x239   :  { %v2546_v52 = vadd.f32 %v185_v51, %v133_v48  ;;  %v212_v54 = vmul.f32 %v2544_v50, %v2544_v50  ;;  %v210_v59 = vpack.c.bf16 %v2544_v50, %v2544_v50 }
 0x23a   :  { %v187_v53 = vpop.f32.mrf.mxu0 }
 0x23b   :  { %v211_v55 = vpack.c.bf16 %v2546_v52, %v2546_v52  ;;  %v213_v56 = vmul.f32 %v2546_v52, %v2546_v52  ;;  %v214_v62 = vpack.c.bf16 %v212_v54, %v212_v54 }
 0x23c   :  { %v188_v58 = vpop.f32.mrf.mxu0 }
 0x23d   :  { %1827 = vmatprep.mubr.msk.bf16.mxu1 %vm316_vm3, %v211_v55  ;;  %v215_v61 = vpack.c.bf16 %v213_v56, %v213_v56 }
 0x23e   :  { %353 = vmatmul.mubr.bf16.vlgmr.msra.gmra.mxu1 %v210_v59 }
 0x23f   :  { %1828 = vmatprep.mubr.msk.bf16.mxu0 %vm316_vm3, %v215_v61  ;;  %557 = vmatpush1.bf16.msra.mxu1 %v2013_v57 }
 0x240   :  { %397 = vmatmul.mubr.bf16.vlgmr.msra.gmra.mxu0 %v214_v62  ;;  %558 = vmatprep.subr.bf16.mxu1 %v2018_v60 }
 0x241   :  { %753 = vmatpush1.bf16.msra.mxu0 %v2043_v35  ;;  %v2066_v35 = vld [vmem:[#allocation8 + $0x44] ss:$8 sps:$4 sm:$0xff]  }
 0x243   :  { %559 = vmatpush1.bf16.msra.mxu1 %v2016_v63 }
 0x244   :  { %560 = vmatprep.subr.bf16.mxu1 %v2021_v0 }
 0x247   :  { %561 = vmatpush1.bf16.msra.mxu1 %v2019_v1 }
 0x248   :  { %562 = vmatprep.subr.bf16.mxu1 %v2024_v2 }
 0x24b   :  { %563 = vmatpush1.bf16.msra.mxu1 %v2022_v4 }
 0x24c   :  { %564 = vmatprep.subr.bf16.mxu1 %v2027_v5 }
 0x24f   :  { %565 = vmatpush1.bf16.msra.mxu1 %v2025_v6  ;;  %v2046_v6 = vld [vmem:[#allocation8 + $0x70] ss:$8 sps:$4 sm:$0xff]  }
 0x250   :  { %566 = vmatprep.subr.bf16.mxu1 %v2030_v7 }
 0x253   :  { %567 = vmatpush1.bf16.msra.mxu1 %v2028_v8  ;;  %v2051_v8 = vld [vmem:[#allocation7 + $0x64] ss:$8 sps:$4 sm:$0xff]  }
 0x254   :  { %568 = vmatprep.subr.bf16.mxu1 %v2033_v27  ;;  %v2049_v27 = vld [vmem:[#allocation7 + $0x60] ss:$8 sps:$4 sm:$0xff]   ;;  %754 = vmatprep.subr.bf16.mxu0 %v2051_v8 }
 0x255   :  { %755 = vmatpush1.bf16.msra.mxu0 %v2049_v27 }
 0x257   :  { %569 = vmatpush1.bf16.msra.mxu1 %v2031_v26  ;;  %v2054_v26 = vld [vmem:[#allocation8 + $0x64] ss:$8 sps:$4 sm:$0xff]  }
 0x258   :  { %570 = vmatprep.subr.bf16.mxu1 %v2036_v28  ;;  %v2052_v28 = vld [vmem:[#allocation8 + $0x60] ss:$8 sps:$4 sm:$0xff]  }
 0x25b   :  { %571 = vmatpush1.bf16.msra.mxu1 %v2034_v29  ;;  %v2057_v29 = vld [vmem:[#allocation7 + $0x54] ss:$8 sps:$4 sm:$0xff]  }
 0x25c   :  { %584 = vmatprep.subr.bf16.mxu1 %v2039_v30  ;;  %v2060_v30 = vld [vmem:[#allocation8 + $0x54] ss:$8 sps:$4 sm:$0xff]   ;;  %756 = vmatprep.subr.bf16.mxu0 %v2057_v29 }
 0x25f   :  { %585 = vmatpush2.bf16.msra.mxu1 %v2037_v31  ;;  %v2055_v31 = vld [vmem:[#allocation7 + $0x50] ss:$8 sps:$4 sm:$0xff]  }
 0x260   :  { %586 = vmatprep.subr.bf16.mxu1 %v2042_v32  ;;  %v2058_v32 = vld [vmem:[#allocation8 + $0x50] ss:$8 sps:$4 sm:$0xff]   ;;  %757 = vmatpush1.bf16.msra.mxu0 %v2055_v31 }
 0x263   :  { %587 = vmatpush2.bf16.msra.mxu1 %v2040_v34  ;;  %v2063_v34 = vld [vmem:[#allocation7 + $0x44] ss:$8 sps:$4 sm:$0xff]  }
 0x264   :  { %925 = vmatprep.subr.bf16.mxu1 %v2048_v41  ;;  %v2064_v41 = vld [vmem:[#allocation8 + $0x40] ss:$8 sps:$4 sm:$0xff]   ;;  %758 = vmatprep.subr.bf16.mxu0 %v2063_v34 }
 0x265   :  { %759 = vmatpush1.bf16.msra.mxu0 %v2061_v36 }
 0x2fe   :  { %v354_v42 = vpop.f32.mrf.mxu1 }
 0x2ff   :  { %v405_v43 = vmul.f32 %v354_v42, %v354_v42  ;;  %v411_v63 = vsub.f32 %v2544_v50, %v354_v42  ;;  %v2069_v42 = vld [vmem:[#allocation7 + $0x34] ss:$8 sps:$4 sm:$0xff]  }
 0x300   :  { %v356_v45 = vpop.f32.mrf.mxu1  ;;  %v398_v47 = vpop.f32.mrf.mxu0  ;;  %760 = vmatprep.subr.bf16.mxu0 %v2069_v42 }
 0x301   :  { %v406_v48 = vmul.f32 %v356_v45, %v356_v45  ;;  %v407_v49 = vsub.f32 %v398_v47, %v405_v43  ;;  %v412_v0 = vsub.f32 %v2546_v52, %v356_v45  ;;  %v2072_v43 = vld [vmem:[#allocation8 + $0x34] ss:$8 sps:$4 sm:$0xff]   ;;  %v2067_v45 = vld [vmem:[#allocation7 + $0x30] ss:$8 sps:$4 sm:$0xff]  }
 0x302   :  { %v358_v51 = vpop.f32.mrf.mxu1  ;;  %v400_v53 = vpop.f32.mrf.mxu0  ;;  %v2070_v47 = vld [vmem:[#allocation8 + $0x30] ss:$8 sps:$4 sm:$0xff]   ;;  %761 = vmatpush1.bf16.msra.mxu0 %v2067_v45 }
 0x303   :  { %v409_v54 = vmax.f32 %v407_v49, 0.0  ;;  %v408_v55 = vsub.f32 %v400_v53, %v406_v48  ;;  %v2073_v48 = vld [vmem:[#allocation7 + $0x20] ss:$8 sps:$4 sm:$0xff]   ;;  %v2075_v49 = vld [vmem:[#allocation7 + $0x24] ss:$8 sps:$4 sm:$0xff]  }
 0x304   :  { %v359_v56 = vpop.f32.mrf.mxu1  ;;  %v402_v57 = vpop.f32.mrf.mxu0  ;;  %v2076_v51 = vld [vmem:[#allocation8 + $0x20] ss:$8 sps:$4 sm:$0xff]   ;;  %v2078_v53 = vld [vmem:[#allocation8 + $0x24] ss:$8 sps:$4 sm:$0xff]   ;;  %762 = vmatprep.subr.bf16.mxu0 %v2075_v49 }
 0x305   :  { %v413_v58 = vadd.f32 1e-05, %v409_v54  ;;  %v410_v59 = vmax.f32 %v408_v55, 0.0  ;;  %v2081_v54 = vld [vmem:[#allocation7 + $0x14] ss:$8 sps:$4 sm:$0xff]  }
 0x306   :  { %v403_v60 = vpop.f32.mrf.mxu0  ;;  %v2084_v55 = vld [vmem:[#allocation8 + $0x14] ss:$8 sps:$4 sm:$0xff]   ;;  %763 = vmatpush1.bf16.msra.mxu0 %v2073_v48  ;;  %v2079_v56 = vld [vmem:[#allocation7 + $0x10] ss:$8 sps:$4 sm:$0xff]  }
 0x307   :  { %2207 = vrsqrt.f32 %v413_v58  ;;  %v414_v61 = vadd.f32 1e-05, %v410_v59  ;;  %v2082_v57 = vld [vmem:[#allocation8 + $0x10] ss:$8 sps:$4 sm:$0xff]   ;;  %764 = vmatprep.subr.bf16.mxu0 %v2081_v54  ;;  %v2087_v58 = vld [vmem:[#allocation7 + $0x4] ss:$8 sps:$4 sm:$0xff]  }
 0x308   :  { %v2090_v59 = vld [vmem:[#allocation8 + $0x4] ss:$8 sps:$4 sm:$0xff]   ;;  %v2085_v60 = vld [vmem:[#allocation7] ss:$8 sps:$4 sm:$0xff]  }
 0x309   :  { %2209 = vrsqrt.f32 %v414_v61  ;;  %v2088_v61 = vld [vmem:[#allocation8] ss:$8 sps:$4 sm:$0xff]  }
 0x30a   :  { %765 = vmatpush1.bf16.msra.mxu0 %v2079_v56 }
 0x30b   :  { %766 = vmatprep.subr.bf16.mxu0 %v2087_v58 }
 0x30e   :  { %767 = vmatpush1.bf16.msra.mxu0 %v2085_v60 }
 0x314   :  { %v2208_v62 = vpop.eup %2207 }
 0x315   :  { %v417_v2 = vmul.f32 %v2208_v62, %v411_v63  ;;  %v2093_v62 = vld [vmem:[#allocation7 + $0x94] ss:$8 sps:$4 sm:$0xff]  }
 0x316   :  { %v2210_v1 = vpop.eup %2209  ;;  %v2096_v63 = vld [vmem:[#allocation8 + $0x94] ss:$8 sps:$4 sm:$0xff]   ;;  %780 = vmatprep.subr.bf16.mxu0 %v2093_v62 }
 0x317   :  { %v418_v4 = vmul.f32 %v2210_v1, %v412_v0  ;;  %v419_v7 = vpack.c.bf16 %v417_v2, %v417_v2  ;;  %v2091_v0 = vld [vmem:[#allocation7 + $0x90] ss:$8 sps:$4 sm:$0xff]   ;;  %v2099_v2 = vld [vmem:[#allocation7 + $0x84] ss:$8 sps:$4 sm:$0xff]  }
 0x318   :  { %v2094_v1 = vld [vmem:[#allocation8 + $0x90] ss:$8 sps:$4 sm:$0xff]   ;;  %781 = vmatpush2.bf16.msra.mxu0 %v2091_v0 }
 0x319   :  { %v420_v5 = vpack.c.bf16 %v418_v4, %v418_v4  ;;  %v2102_v4 = vld [vmem:[#allocation8 + $0x84] ss:$8 sps:$4 sm:$0xff]   ;;  %782 = vmatprep.subr.bf16.mxu0 %v2099_v2 }
 0x31b   :  { %1849 = vmatprep.mubr.msk.bf16.mxu1 %vm316_vm3, %v420_v5  ;;  %v2097_v5 = vld [vmem:[#allocation7 + $0x80] ss:$8 sps:$4 sm:$0xff]  }
 0x31c   :  { %589 = vmatmul.mubr.bf16.vlgmr.msra.gmra.mxu1 %v419_v7  ;;  %783 = vmatpush2.bf16.msra.mxu0 %v2097_v5  ;;  %v441_v7 = vld [vmem:[%s2710_s5] sm:$0x3] }
 0x31d   :  { %926 = vmatpush1.bf16.msra.mxu1 %v2046_v6  ;;  %v2100_v6 = vld [vmem:[#allocation8 + $0x80] ss:$8 sps:$4 sm:$0xff]   ;;  %987 = vmatprep.subr.bf16.mxu0 %v2451_v10  ;;  %v446_v8 = vrot.slane %v441_v7, %v2535_v44 }
 0x31e   :  { %927 = vmatprep.subr.bf16.mxu1 %v2054_v26  ;;  %v450_v26 = vrot.slane %v441_v7, %v2540_v46 }
 0x321   :  { %928 = vmatpush1.bf16.msra.mxu1 %v2052_v28 }
 0x322   :  { %929 = vmatprep.subr.bf16.mxu1 %v2060_v30 }
 0x325   :  { %930 = vmatpush1.bf16.msra.mxu1 %v2058_v32 }
 0x326   :  { %931 = vmatprep.subr.bf16.mxu1 %v2066_v35 }
 0x329   :  { %932 = vmatpush1.bf16.msra.mxu1 %v2064_v41 }
 0x32a   :  { %933 = vmatprep.subr.bf16.mxu1 %v2072_v43 }
 0x32d   :  { %934 = vmatpush1.bf16.msra.mxu1 %v2070_v47 }
 0x32e   :  { %935 = vmatprep.subr.bf16.mxu1 %v2078_v53 }
 0x331   :  { %936 = vmatpush1.bf16.msra.mxu1 %v2076_v51 }
 0x332   :  { %937 = vmatprep.subr.bf16.mxu1 %v2084_v55 }
 0x335   :  { %938 = vmatpush1.bf16.msra.mxu1 %v2082_v57 }
 0x336   :  { %939 = vmatprep.subr.bf16.mxu1 %v2090_v59 }
 0x339   :  { %940 = vmatpush1.bf16.msra.mxu1 %v2088_v61 }
 0x33a   :  { %953 = vmatprep.subr.bf16.mxu1 %v2096_v63 }
 0x33d   :  { %954 = vmatpush2.bf16.msra.mxu1 %v2094_v1 }
 0x33e   :  { %955 = vmatprep.subr.bf16.mxu1 %v2102_v4 }
 0x341   :  { %956 = vmatpush2.bf16.msra.mxu1 %v2100_v6 }
 0x342   :  { %1031 = vmatprep.subr.bf16.mxu1 %v2451_v10 }
 0x3dc   :  { %v590_v27 = vpop.f32.mrf.mxu1 }
 0x3dd   :  { %v591_v28 = vadd.f32 %v590_v27, %v446_v8 }
 0x3de   :  { %v592_v29 = vpop.f32.mrf.mxu1 }
 0x3df   :  { %v599_v30 = vmul.f32 0.044715, %v591_v28  ;;  %v593_v31 = vadd.f32 %v592_v29, %v450_v26  ;;  %v597_v54 = vmul.f32 0.5, %v591_v28 }
 0x3e0   :  { %v594_v32 = vpop.f32.mrf.mxu1 }
 0x3e1   :  { %v601_v34 = vmul.f32 %v599_v30, %v591_v28  ;;  %v600_v35 = vmul.f32 0.044715, %v593_v31  ;;  %v598_v55 = vmul.f32 0.5, %v593_v31  ;;  %v2103_v30 = vld [vmem:[#allocation5 + $0x110] ss:$8 sps:$4 sm:$0xff]  }
 0x3e2   :  { %v595_v36 = vpop.f32.mrf.mxu1  ;;  %v2108_v32 = vld [vmem:[#allocation5 + $0x104] ss:$8 sps:$4 sm:$0xff]  }
 0x3e3   :  { %v603_v41 = vmul.f32 %v601_v34, %v591_v28  ;;  %v602_v42 = vmul.f32 %v600_v35, %v593_v31  ;;  %v2106_v34 = vld [vmem:[#allocation5 + $0x100] ss:$8 sps:$4 sm:$0xff]   ;;  %v2111_v35 = vld [vmem:[#allocation5 + $0xf4] ss:$8 sps:$4 sm:$0xff]   ;;  %v2109_v36 = vld [vmem:[#allocation5 + $0xf0] ss:$8 sps:$4 sm:$0xff]  }
 0x3e5   :  { %v605_v10 = vadd.f32 %v603_v41, %v591_v28  ;;  %v604_v43 = vmul.f32 %v602_v42, %v593_v31  ;;  %v2114_v41 = vld [vmem:[#allocation5 + $0xe4] ss:$8 sps:$4 sm:$0xff]   ;;  %v2112_v42 = vld [vmem:[#allocation5 + $0xe0] ss:$8 sps:$4 sm:$0xff]  }
 0x3e7   :  { %v607_v45 = vmul.f32 0.7978846, %v605_v10  ;;  %v606_v47 = vadd.f32 %v604_v43, %v593_v31  ;;  %v2117_v10 = vld [vmem:[#allocation5 + $0xd4] ss:$8 sps:$4 sm:$0xff]   ;;  %v2115_v43 = vld [vmem:[#allocation5 + $0xd0] ss:$8 sps:$4 sm:$0xff]  }
 0x3e9   :  { %v608_v48 = vmul.f32 0.7978846, %v606_v47  ;;  %2211 = vtanh.f32 %v607_v45  ;;  %v2120_v45 = vld [vmem:[#allocation5 + $0xc4] ss:$8 sps:$4 sm:$0xff]   ;;  %v2118_v47 = vld [vmem:[#allocation5 + $0xc0] ss:$8 sps:$4 sm:$0xff]  }
 0x3eb   :  { %2213 = vtanh.f32 %v608_v48  ;;  %v2121_v48 = vld [vmem:[#allocation5 + $0xb0] ss:$8 sps:$4 sm:$0xff]  }
 0x3f6   :  { %v2212_v49 = vpop.eup %2211 }
 0x3f7   :  { %v611_v51 = vadd.f32 1.0, %v2212_v49  ;;  %v2123_v49 = vld [vmem:[#allocation5 + $0xb4] ss:$8 sps:$4 sm:$0xff]  }
 0x3f8   :  { %v2214_v53 = vpop.eup %2213 }
 0x3f9   :  { %v612_v56 = vadd.f32 1.0, %v2214_v53  ;;  %v613_v57 = vmul.f32 %v611_v51, %v597_v54  ;;  %v2126_v51 = vld [vmem:[#allocation5 + $0xa4] ss:$8 sps:$4 sm:$0xff]   ;;  %v2124_v53 = vld [vmem:[#allocation5 + $0xa0] ss:$8 sps:$4 sm:$0xff]  }
 0x3fa   :  { %v2129_v54 = vld [vmem:[#allocation5 + $0x134] ss:$8 sps:$4 sm:$0xff]  }
 0x3fb   :  { %v614_v58 = vmul.f32 %v612_v56, %v598_v55  ;;  %v615_v60 = vpack.c.bf16 %v613_v57, %v613_v57  ;;  %v2127_v55 = vld [vmem:[#allocation5 + $0x130] ss:$8 sps:$4 sm:$0xff]   ;;  %v2132_v56 = vld [vmem:[#allocation5 + $0x124] ss:$8 sps:$4 sm:$0xff]   ;;  %v2130_v57 = vld [vmem:[#allocation5 + $0x120] ss:$8 sps:$4 sm:$0xff]  }
 0x3fd   :  { %v616_v59 = vpack.c.bf16 %v614_v58, %v614_v58  ;;  %v2133_v58 = vld [vmem:[#allocation7 + $0x110] ss:$8 sps:$4 sm:$0xff]  }
 0x3ff   :  { %1870 = vmatprep.mubr.msk.bf16.mxu0 %vm316_vm3, %v616_v59  ;;  %1891 = vmatprep.mubr.msk.bf16.mxu1 %vm316_vm3, %v616_v59  ;;  %v2135_v59 = vld [vmem:[#allocation7 + $0x114] ss:$8 sps:$4 sm:$0xff]  }
 0x400   :  { %785 = vmatmul.mubr.bf16.vlgmr.msra.gmra.mxu0 %v615_v60  ;;  %958 = vmatmul.mubr.bf16.vlgmr.msra.gmra.mxu1 %v615_v60  ;;  %v2138_v60 = vld [vmem:[#allocation8 + $0x114] ss:$8 sps:$4 sm:$0xff]  }
 0x401   :  { %988 = vmatpush1.bf16.msra.mxu0 %v2453_v11  ;;  %1032 = vmatpush1.bf16.msra.mxu1 %v2453_v11  ;;  %v2105_v11 = vld [vmem:[#allocation5 + $0x114] ss:$8 sps:$4 sm:$0xff]  }
 0x402   :  { %989 = vmatprep.subr.bf16.mxu0 %v2455_v12  ;;  %1033 = vmatprep.subr.bf16.mxu1 %v2455_v12  ;;  %v813_v12 = vld [vmem:[%s2714_s9] sm:$0x3] }
 0x405   :  { %990 = vmatpush1.bf16.msra.mxu0 %v2460_v13  ;;  %1034 = vmatpush1.bf16.msra.mxu1 %v2460_v13  ;;  %v818_v13 = vrot.slane %v813_v12, %v2535_v44 }
 0x406   :  { %991 = vmatprep.subr.bf16.mxu0 %v2463_v14  ;;  %1035 = vmatprep.subr.bf16.mxu1 %v2463_v14  ;;  %v822_v14 = vrot.slane %v813_v12, %v2540_v46 }
 0x409   :  { %992 = vmatpush1.bf16.msra.mxu0 %v2466_v15  ;;  %1036 = vmatpush1.bf16.msra.mxu1 %v2466_v15 }
 0x40a   :  { %993 = vmatprep.subr.bf16.mxu0 %v2469_v16  ;;  %1037 = vmatprep.subr.bf16.mxu1 %v2469_v16 }
 0x40d   :  { %994 = vmatpush1.bf16.msra.mxu0 %v2472_v17  ;;  %1038 = vmatpush1.bf16.msra.mxu1 %v2472_v17 }
 0x40e   :  { %995 = vmatprep.subr.bf16.mxu0 %v2475_v18  ;;  %1039 = vmatprep.subr.bf16.mxu1 %v2475_v18 }
 0x411   :  { %996 = vmatpush1.bf16.msra.mxu0 %v2478_v19  ;;  %1040 = vmatpush1.bf16.msra.mxu1 %v2478_v19 }
 0x412   :  { %997 = vmatprep.subr.bf16.mxu0 %v2481_v20  ;;  %1041 = vmatprep.subr.bf16.mxu1 %v2481_v20 }
 0x415   :  { %998 = vmatpush1.bf16.msra.mxu0 %v2484_v21  ;;  %1042 = vmatpush1.bf16.msra.mxu1 %v2484_v21 }
 0x416   :  { %999 = vmatprep.subr.bf16.mxu0 %v2487_v22  ;;  %1043 = vmatprep.subr.bf16.mxu1 %v2487_v22 }
 0x419   :  { %1000 = vmatpush1.bf16.msra.mxu0 %v2490_v23  ;;  %1044 = vmatpush1.bf16.msra.mxu1 %v2490_v23 }
 0x41a   :  { %1001 = vmatprep.subr.bf16.mxu0 %v2493_v24  ;;  %1045 = vmatprep.subr.bf16.mxu1 %v2493_v24 }
 0x41d   :  { %1002 = vmatpush1.bf16.msra.mxu0 %v2496_v25  ;;  %1046 = vmatpush1.bf16.msra.mxu1 %v2496_v25 }
 0x41e   :  { %1015 = vmatprep.subr.bf16.mxu0 %v2519_v37  ;;  %1059 = vmatprep.subr.bf16.mxu1 %v2519_v37 }
 0x421   :  { %1016 = vmatpush2.bf16.msra.mxu0 %v2521_v38  ;;  %1060 = vmatpush2.bf16.msra.mxu1 %v2521_v38  ;;  %v637_v38 = vld [vmem:[%s2713_s8] sm:$0x3] }
 0x422   :  { %1017 = vmatprep.subr.bf16.mxu0 %v2527_v39  ;;  %1061 = vmatprep.subr.bf16.mxu1 %v2527_v39  ;;  %v642_v39 = vrot.slane %v637_v38, %v2535_v44  ;;  %v646_v62 = vrot.slane %v637_v38, %v2540_v46 }
 0x425   :  { %1018 = vmatpush2.bf16.msra.mxu0 %v2529_v40  ;;  %1062 = vmatpush2.bf16.msra.mxu1 %v2529_v40 }
 0x426   :  { %1225 = vmatprep.subr.bf16.mxu0 %v2105_v11  ;;  %1423 = vmatprep.subr.bf16.mxu1 %v2135_v59  ;;  %v2181_v59 = vld [vmem:[#allocation7 + $0x130] ss:$8 sps:$4 sm:$0xff]  }
 0x4c0   :  { %v786_v15 = vpop.f32.mrf.mxu0  ;;  %v959_v16 = vpop.f32.mrf.mxu1 }
 0x4c1   :  { %v960_v17 = vadd.f32 %v959_v16, %v818_v13  ;;  %v787_v0 = vadd.f32 %v786_v15, %v642_v39 }
 0x4c2   :  { %v788_v18 = vpop.f32.mrf.mxu0  ;;  %v961_v19 = vpop.f32.mrf.mxu1 }
 0x4c3   :  { %v966_v20 = vmul.f32 0.5, %v960_v17  ;;  %v962_v21 = vadd.f32 %v961_v19, %v822_v14  ;;  %v789_v5 = vadd.f32 %v788_v18, %v646_v62 }
 0x4c4   :  { %v790_v22 = vpop.f32.mrf.mxu0  ;;  %v963_v23 = vpop.f32.mrf.mxu1 }
 0x4c5   :  { %2215 = vtanh.f32 %v966_v20  ;;  %v967_v24 = vmul.f32 0.5, %v962_v21 }
 0x4c6   :  { %v791_v25 = vpop.f32.mrf.mxu0  ;;  %v964_v37 = vpop.f32.mrf.mxu1 }
 0x4c7   :  { %2217 = vtanh.f32 %v967_v24 }
 0x4d2   :  { %v2216_v40 = vpop.eup %2215 }
 0x4d3   :  { %v970_v61 = vadd.f32 1.0, %v2216_v40 }
 0x4d4   :  { %v2218_v63 = vpop.eup %2217 }
 0x4d5   :  { %v972_v1 = vmul.f32 0.5, %v970_v61  ;;  %v971_v2 = vadd.f32 1.0, %v2218_v63 }
 0x4d7   :  { %v974_v4 = vmul.f32 %v972_v1, %v787_v0  ;;  %v973_v6 = vmul.f32 0.5, %v971_v2  ;;  %v2136_v1 = vld [vmem:[#allocation8 + $0x110] ss:$8 sps:$4 sm:$0xff]  }
 0x4d9   :  { %v2619_v7 = vadd.f32 %v974_v4, %v2544_v50  ;;  %v975_v8 = vmul.f32 %v973_v6, %v789_v5  ;;  %v2141_v4 = vld [vmem:[#allocation7 + $0x104] ss:$8 sps:$4 sm:$0xff]   ;;  %v2139_v6 = vld [vmem:[#allocation7 + $0x100] ss:$8 sps:$4 sm:$0xff]  }
 0x4da   :  { %v2144_v5 = vld [vmem:[#allocation8 + $0x104] ss:$8 sps:$4 sm:$0xff]  }
 0x4db   :  { %v2622_v26 = vadd.f32 %v975_v8, %v2546_v52  ;;  %v980_v27 = vmul.f32 %v2619_v7, %v2619_v7  ;;  %v978_v31 = vpack.c.bf16 %v2619_v7, %v2619_v7  ;;  %v2142_v8 = vld [vmem:[#allocation8 + $0x100] ss:$8 sps:$4 sm:$0xff]  }
 0x4dd   :  { %v979_v28 = vpack.c.bf16 %v2622_v26, %v2622_v26  ;;  %v981_v29 = vmul.f32 %v2622_v26, %v2622_v26  ;;  %v982_v52 = vpack.c.bf16 %v980_v27, %v980_v27  ;;  %v2147_v27 = vld [vmem:[#allocation7 + $0xf4] ss:$8 sps:$4 sm:$0xff]  }
 0x4df   :  { %1892 = vmatprep.mubr.msk.bf16.mxu0 %vm316_vm3, %v979_v28  ;;  %v983_v50 = vpack.c.bf16 %v981_v29, %v981_v29  ;;  %v2150_v28 = vld [vmem:[#allocation8 + $0xf4] ss:$8 sps:$4 sm:$0xff]   ;;  %v2145_v29 = vld [vmem:[#allocation7 + $0xf0] ss:$8 sps:$4 sm:$0xff]  }
 0x4e0   :  { %1020 = vmatmul.mubr.bf16.vlgmr.msra.gmra.mxu0 %v978_v31  ;;  %v2153_v31 = vld [vmem:[#allocation7 + $0xe4] ss:$8 sps:$4 sm:$0xff]  }
 0x4e1   :  { %1893 = vmatprep.mubr.msk.bf16.mxu1 %vm316_vm3, %v983_v50  ;;  %1226 = vmatpush1.bf16.msra.mxu0 %v2103_v30  ;;  %v2148_v30 = vld [vmem:[#allocation8 + $0xf0] ss:$8 sps:$4 sm:$0xff]   ;;  %v2151_v50 = vld [vmem:[#allocation7 + $0xe0] ss:$8 sps:$4 sm:$0xff]  }
 0x4e2   :  { %1064 = vmatmul.mubr.bf16.vlgmr.msra.gmra.mxu1 %v982_v52  ;;  %1227 = vmatprep.subr.bf16.mxu0 %v2108_v32  ;;  %v2156_v32 = vld [vmem:[#allocation8 + $0xe4] ss:$8 sps:$4 sm:$0xff]   ;;  %v2154_v52 = vld [vmem:[#allocation8 + $0xe0] ss:$8 sps:$4 sm:$0xff]  }
 0x4e3   :  { %1424 = vmatpush1.bf16.msra.mxu1 %v2133_v58  ;;  %v2186_v58 = vld [vmem:[#allocation8 + $0x134] ss:$8 sps:$4 sm:$0xff]  }
 0x4e4   :  { %1425 = vmatprep.subr.bf16.mxu1 %v2141_v4 }
 0x4e5   :  { %1228 = vmatpush1.bf16.msra.mxu0 %v2106_v34  ;;  %v2159_v34 = vld [vmem:[#allocation7 + $0xd4] ss:$8 sps:$4 sm:$0xff]  }
 0x4e6   :  { %1229 = vmatprep.subr.bf16.mxu0 %v2111_v35  ;;  %v2162_v35 = vld [vmem:[#allocation8 + $0xd4] ss:$8 sps:$4 sm:$0xff]  }
 0x4e7   :  { %1426 = vmatpush1.bf16.msra.mxu1 %v2139_v6 }
 0x4e8   :  { %1427 = vmatprep.subr.bf16.mxu1 %v2147_v27 }
 0x4e9   :  { %1230 = vmatpush1.bf16.msra.mxu0 %v2109_v36  ;;  %v2157_v36 = vld [vmem:[#allocation7 + $0xd0] ss:$8 sps:$4 sm:$0xff]  }
 0x4ea   :  { %1231 = vmatprep.subr.bf16.mxu0 %v2114_v41  ;;  %v2160_v41 = vld [vmem:[#allocation8 + $0xd0] ss:$8 sps:$4 sm:$0xff]  }
 0x4eb   :  { %1428 = vmatpush1.bf16.msra.mxu1 %v2145_v29 }
 0x4ec   :  { %1429 = vmatprep.subr.bf16.mxu1 %v2153_v31 }
 0x4ed   :  { %1232 = vmatpush1.bf16.msra.mxu0 %v2112_v42  ;;  %v2163_v42 = vld [vmem:[#allocation7 + $0xc0] ss:$8 sps:$4 sm:$0xff]  }
 0x4ee   :  { %1233 = vmatprep.subr.bf16.mxu0 %v2117_v10  ;;  %v2165_v10 = vld [vmem:[#allocation7 + $0xc4] ss:$8 sps:$4 sm:$0xff]  }
 0x4ef   :  { %1430 = vmatpush1.bf16.msra.mxu1 %v2151_v50  ;;  %v2195_v50 = vld [vmem:[%s2715_s10 + $0x28] sm:$0xff]  }
 0x4f0   :  { %1431 = vmatprep.subr.bf16.mxu1 %v2159_v34  ;;  %v2197_v34 = vld [vmem:[%s2715_s10 + $0x18] sm:$0xff]  }
 0x4f1   :  { %1234 = vmatpush1.bf16.msra.mxu0 %v2115_v43  ;;  %v2166_v43 = vld [vmem:[#allocation8 + $0xc0] ss:$8 sps:$4 sm:$0xff]  }
 0x4f2   :  { %1235 = vmatprep.subr.bf16.mxu0 %v2120_v45  ;;  %v2168_v45 = vld [vmem:[#allocation8 + $0xc4] ss:$8 sps:$4 sm:$0xff]  }
 0x4f3   :  { %1432 = vmatpush1.bf16.msra.mxu1 %v2157_v36  ;;  %v2199_v36 = vld [vmem:[%s2715_s10 + $0x8] sm:$0xff]  }
 0x4f4   :  { %1433 = vmatprep.subr.bf16.mxu1 %v2165_v10  ;;  %v2202_v10 = vld [vmem:[%s2715_s10 + $0x40] sm:$0xff]  }
 0x4f5   :  { %1236 = vmatpush1.bf16.msra.mxu0 %v2118_v47  ;;  %v2171_v47 = vld [vmem:[#allocation7 + $0xb4] ss:$8 sps:$4 sm:$0xff]  }
 0x4f6   :  { %1237 = vmatprep.subr.bf16.mxu0 %v2123_v49  ;;  %v2169_v49 = vld [vmem:[#allocation7 + $0xb0] ss:$8 sps:$4 sm:$0xff]  }
 0x4f7   :  { %1434 = vmatpush1.bf16.msra.mxu1 %v2163_v42  ;;  %v2201_v42 = vld [vmem:[%s2715_s10 + $0x48] sm:$0xff]  }
 0x4f8   :  { %1435 = vmatprep.subr.bf16.mxu1 %v2171_v47 }
 0x4f9   :  { %1238 = vmatpush1.bf16.msra.mxu0 %v2121_v48  ;;  %v2174_v48 = vld [vmem:[#allocation8 + $0xb4] ss:$8 sps:$4 sm:$0xff]  }
 0x4fa   :  { %1239 = vmatprep.subr.bf16.mxu0 %v2126_v51  ;;  %v2172_v51 = vld [vmem:[#allocation8 + $0xb0] ss:$8 sps:$4 sm:$0xff]  }
 0x4fb   :  { %1436 = vmatpush1.bf16.msra.mxu1 %v2169_v49 }
 0x4fd   :  { %1240 = vmatpush1.bf16.msra.mxu0 %v2124_v53  ;;  %v2177_v53 = vld [vmem:[#allocation7 + $0xa4] ss:$8 sps:$4 sm:$0xff]  }
 0x4fe   :  { %1253 = vmatprep.subr.bf16.mxu0 %v2129_v54  ;;  %v2180_v54 = vld [vmem:[#allocation8 + $0xa4] ss:$8 sps:$4 sm:$0xff]   ;;  %1437 = vmatprep.subr.bf16.mxu1 %v2177_v53 }
 0x501   :  { %1254 = vmatpush2.bf16.msra.mxu0 %v2127_v55  ;;  %v2175_v55 = vld [vmem:[#allocation7 + $0xa0] ss:$8 sps:$4 sm:$0xff]  }
 0x502   :  { %1255 = vmatprep.subr.bf16.mxu0 %v2132_v56  ;;  %v2178_v56 = vld [vmem:[#allocation8 + $0xa0] ss:$8 sps:$4 sm:$0xff]   ;;  %1438 = vmatpush1.bf16.msra.mxu1 %v2175_v55 }
 0x505   :  { %1256 = vmatpush2.bf16.msra.mxu0 %v2130_v57  ;;  %v2183_v57 = vld [vmem:[#allocation7 + $0x134] ss:$8 sps:$4 sm:$0xff]  }
 0x506   :  { %1598 = vmatprep.subr.bf16.mxu0 %v2138_v60  ;;  %v2184_v60 = vld [vmem:[#allocation8 + $0x130] ss:$8 sps:$4 sm:$0xff]   ;;  %1451 = vmatprep.subr.bf16.mxu1 %v2183_v57 }
 0x507   :  { %1452 = vmatpush2.bf16.msra.mxu1 %v2181_v59 }
 0x5a0   :  { %v1021_v11 = vpop.f32.mrf.mxu0 }
 0x5a1   :  { %v1072_v12 = vmul.f32 %v1021_v11, %v1021_v11  ;;  %v1078_v39 = vsub.f32 %v2619_v7, %v1021_v11  ;;  %v2189_v11 = vld [vmem:[#allocation7 + $0x124] ss:$8 sps:$4 sm:$0xff]  }
 0x5a2   :  { %v1023_v13 = vpop.f32.mrf.mxu0  ;;  %v1065_v14 = vpop.f32.mrf.mxu1  ;;  %1453 = vmatprep.subr.bf16.mxu1 %v2189_v11  ;;  %v1916_v11 = vld [vmem:[%s2713_s8 + $0x2] sm:$0x3] }
 0x5a3   :  { %v1073_v15 = vmul.f32 %v1023_v13, %v1023_v13  ;;  %v1074_v16 = vsub.f32 %v1065_v14, %v1072_v12  ;;  %v1079_v40 = vsub.f32 %v2622_v26, %v1023_v13  ;;  %v2192_v12 = vld [vmem:[#allocation8 + $0x124] ss:$8 sps:$4 sm:$0xff]   ;;  %v2187_v13 = vld [vmem:[#allocation7 + $0x120] ss:$8 sps:$4 sm:$0xff]  }
 0x5a4   :  { %v1025_v17 = vpop.f32.mrf.mxu0  ;;  %v1067_v18 = vpop.f32.mrf.mxu1  ;;  %v2190_v14 = vld [vmem:[#allocation8 + $0x120] ss:$8 sps:$4 sm:$0xff]   ;;  %1454 = vmatpush2.bf16.msra.mxu1 %v2187_v13 }
 0x5a5   :  { %v1076_v19 = vmax.f32 %v1074_v16, 0.0  ;;  %v1075_v20 = vsub.f32 %v1067_v18, %v1073_v15  ;;  %1743 = vmatprep.subr.bf16.mxu1 %v2345_v9  ;;  %v1894_v15 = vld [vmem:[%s2710_s5 + $0x2] sm:$0x3] }
 0x5a6   :  { %v1026_v21 = vpop.f32.mrf.mxu0  ;;  %v1069_v22 = vpop.f32.mrf.mxu1  ;;  %v1115_v16 = vrot.slane %v1894_v15, %v2535_v44  ;;  %v1119_v17 = vrot.slane %v1894_v15, %v2540_v46  ;;  %v1317_v15 = vrot.slane %v1916_v11, %v2540_v46 }
 0x5a7   :  { %v1080_v23 = vadd.f32 1e-05, %v1076_v19  ;;  %v1077_v24 = vmax.f32 %v1075_v20, 0.0 }
 0x5a8   :  { %v1070_v25 = vpop.f32.mrf.mxu1 }
 0x5a9   :  { %2219 = vrsqrt.f32 %v1080_v23  ;;  %v1081_v37 = vadd.f32 1e-05, %v1077_v24 }
 0x5ab   :  { %2221 = vrsqrt.f32 %v1081_v37 }
 0x5b6   :  { %v2220_v38 = vpop.eup %2219 }
 0x5b7   :  { %v1084_v62 = vmul.f32 %v2220_v38, %v1078_v39 }
 0x5b8   :  { %v2222_v61 = vpop.eup %2221 }
 0x5b9   :  { %v1085_v63 = vmul.f32 %v2222_v61, %v1079_v40  ;;  %v1086_v2 = vpack.c.bf16 %v1084_v62, %v1084_v62 }
 0x5bb   :  { %v1087_v0 = vpack.c.bf16 %v1085_v63, %v1085_v63 }
 0x5bd   :  { %1915 = vmatprep.mubr.msk.bf16.mxu0 %vm316_vm3, %v1087_v0 }
 0x5be   :  { %1258 = vmatmul.mubr.bf16.vlgmr.msra.gmra.mxu0 %v1086_v2 }
 0x5bf   :  { %1599 = vmatpush1.bf16.msra.mxu0 %v2136_v1 }
 0x5c0   :  { %1600 = vmatprep.subr.bf16.mxu0 %v2144_v5 }
 0x5c3   :  { %1601 = vmatpush1.bf16.msra.mxu0 %v2142_v8 }
 0x5c4   :  { %1602 = vmatprep.subr.bf16.mxu0 %v2150_v28 }
 0x5c7   :  { %1603 = vmatpush1.bf16.msra.mxu0 %v2148_v30  ;;  %v2193_v30 = vld [vmem:[%s2715_s10 + $0x38] sm:$0xff]  }
 0x5c8   :  { %1604 = vmatprep.subr.bf16.mxu0 %v2156_v32  ;;  %v2194_v32 = vld [vmem:[%s2715_s10 + $0x30] sm:$0xff]  }
 0x5cb   :  { %1605 = vmatpush1.bf16.msra.mxu0 %v2154_v52  ;;  %v2196_v52 = vld [vmem:[%s2715_s10 + $0x20] sm:$0xff]  }
 0x5cc   :  { %1606 = vmatprep.subr.bf16.mxu0 %v2162_v35  ;;  %v2198_v35 = vld [vmem:[%s2715_s10 + $0x10] sm:$0xff]  }
 0x5cf   :  { %1607 = vmatpush1.bf16.msra.mxu0 %v2160_v41  ;;  %v2200_v41 = vld [vmem:[%s2715_s10] sm:$0xff]  }
 0x5d0   :  { %1608 = vmatprep.subr.bf16.mxu0 %v2168_v45 }
 0x5d3   :  { %1609 = vmatpush1.bf16.msra.mxu0 %v2166_v43  ;;  %v1938_v43 = vld [vmem:[%s2714_s9 + $0x2] sm:$0x3] }
 0x5d4   :  { %1610 = vmatprep.subr.bf16.mxu0 %v2174_v48  ;;  %v1491_v45 = vrot.slane %v1938_v43, %v2535_v44  ;;  %v1495_v47 = vrot.slane %v1938_v43, %v2540_v46 }
 0x5d7   :  { %1611 = vmatpush1.bf16.msra.mxu0 %v2172_v51 }
 0x5d8   :  { %1612 = vmatprep.subr.bf16.mxu0 %v2180_v54 }
 0x5db   :  { %1613 = vmatpush1.bf16.msra.mxu0 %v2178_v56 }
 0x5dc   :  { %1626 = vmatprep.subr.bf16.mxu0 %v2186_v58 }
 0x5df   :  { %1627 = vmatpush2.bf16.msra.mxu0 %v2184_v60 }
 0x5e0   :  { %1628 = vmatprep.subr.bf16.mxu0 %v2192_v12  ;;  %v1313_v12 = vrot.slane %v1916_v11, %v2535_v44  ;;  %v1960_v44 = vld [vmem:[%s2716_s11] ss:$0 sm:$0xff] }
 0x5e3   :  { %1629 = vmatpush2.bf16.msra.mxu0 %v2190_v14 }
 0x67e   :  { %v1259_v18 = vpop.f32.mrf.mxu0 }
 0x67f   :  { %v1260_v19 = vadd.f32 %v1259_v18, %v1115_v16 }
 0x680   :  { %v1261_v20 = vpop.f32.mrf.mxu0 }
 0x681   :  { %v1268_v21 = vmul.f32 0.044715, %v1260_v19  ;;  %v1262_v22 = vadd.f32 %v1261_v20, %v1119_v17  ;;  %v1266_v5 = vmul.f32 0.5, %v1260_v19 }
 0x682   :  { %v1263_v23 = vpop.f32.mrf.mxu0 }
 0x683   :  { %v1270_v24 = vmul.f32 %v1268_v21, %v1260_v19  ;;  %v1269_v25 = vmul.f32 0.044715, %v1262_v22  ;;  %v1267_v6 = vmul.f32 0.5, %v1262_v22 }
 0x684   :  { %v1264_v37 = vpop.f32.mrf.mxu0 }
 0x685   :  { %v1272_v38 = vmul.f32 %v1270_v24, %v1260_v19  ;;  %v1271_v39 = vmul.f32 %v1269_v25, %v1262_v22 }
 0x687   :  { %v1274_v40 = vadd.f32 %v1272_v38, %v1260_v19  ;;  %v1273_v61 = vmul.f32 %v1271_v39, %v1262_v22 }
 0x689   :  { %v1276_v62 = vmul.f32 0.7978846, %v1274_v40  ;;  %v1275_v63 = vadd.f32 %v1273_v61, %v1262_v22 }
 0x68b   :  { %v1277_v0 = vmul.f32 0.7978846, %v1275_v63  ;;  %2223 = vtanh.f32 %v1276_v62 }
 0x68d   :  { %2225 = vtanh.f32 %v1277_v0 }
 0x698   :  { %v2224_v1 = vpop.eup %2223 }
 0x699   :  { %v1280_v2 = vadd.f32 1.0, %v2224_v1 }
 0x69a   :  { %v2226_v4 = vpop.eup %2225 }
 0x69b   :  { %v1281_v8 = vadd.f32 1.0, %v2226_v4  ;;  %v1282_v27 = vmul.f32 %v1280_v2, %v1266_v5 }
 0x69d   :  { %v1283_v28 = vmul.f32 %v1281_v8, %v1267_v6  ;;  %v1284_v31 = vpack.c.bf16 %v1282_v27, %v1282_v27 }
 0x69f   :  { %v1285_v29 = vpack.c.bf16 %v1283_v28, %v1283_v28 }
 0x6a1   :  { %1937 = vmatprep.mubr.msk.bf16.mxu1 %vm316_vm3, %v1285_v29  ;;  %1959 = vmatprep.mubr.msk.bf16.mxu0 %vm316_vm3, %v1285_v29 }
 0x6a2   :  { %1456 = vmatmul.mubr.bf16.vlgmr.msra.gmra.mxu1 %v1284_v31  ;;  %1631 = vmatmul.mubr.bf16.vlgmr.msra.gmra.mxu0 %v1284_v31 }
 0x6a3   :  { %1744 = vmatpush1.bf16.msra.mxu1 %v2193_v30 }
 0x6a4   :  { %1745 = vmatprep.subr.bf16.mxu1 %v2345_v9 }
 0x6a7   :  { %1746 = vmatpush1.bf16.msra.mxu1 %v2194_v32 }
 0x6a8   :  { %1747 = vmatprep.subr.bf16.mxu1 %v2345_v9 }
 0x6ab   :  { %1748 = vmatpush1.bf16.msra.mxu1 %v2195_v50 }
 0x6ac   :  { %1749 = vmatprep.subr.bf16.mxu1 %v2345_v9 }
 0x6af   :  { %1750 = vmatpush1.bf16.msra.mxu1 %v2196_v52 }
 0x6b0   :  { %1751 = vmatprep.subr.bf16.mxu1 %v2345_v9 }
 0x6b3   :  { %1752 = vmatpush1.bf16.msra.mxu1 %v2197_v34 }
 0x6b4   :  { %1753 = vmatprep.subr.bf16.mxu1 %v2345_v9 }
 0x6b7   :  { %1754 = vmatpush1.bf16.msra.mxu1 %v2198_v35 }
 0x6b8   :  { %1755 = vmatprep.subr.bf16.mxu1 %v2345_v9 }
 0x6bb   :  { %1756 = vmatpush1.bf16.msra.mxu1 %v2199_v36 }
 0x6bc   :  { %1757 = vmatprep.subr.bf16.mxu1 %v2345_v9 }
 0x6bf   :  { %1758 = vmatpush1.bf16.msra.mxu1 %v2200_v41 }
 0x6c0   :  { %1771 = vmatprep.subr.bf16.mxu1 %v2345_v9 }
 0x6c3   :  { %1772 = vmatpush2.bf16.msra.mxu1 %v2201_v42 }
 0x6c4   :  { %1773 = vmatprep.subr.bf16.mxu1 %v2345_v9 }
 0x6c7   :  { %1774 = vmatpush2.bf16.msra.mxu1 %v2202_v10 }
 0x762   :  { %v1457_v48 = vpop.f32.mrf.mxu1  ;;  %v1632_v49 = vpop.f32.mrf.mxu0 }
 0x763   :  { %v1633_v51 = vadd.f32 %v1632_v49, %v1491_v45  ;;  %v1458_v17 = vadd.f32 %v1457_v48, %v1313_v12 }
 0x764   :  { %v1459_v53 = vpop.f32.mrf.mxu1  ;;  %v1634_v54 = vpop.f32.mrf.mxu0 }
 0x765   :  { %v1639_v55 = vmul.f32 0.5, %v1633_v51  ;;  %v1635_v56 = vadd.f32 %v1634_v54, %v1495_v47  ;;  %v1460_v21 = vadd.f32 %v1459_v53, %v1317_v15 }
 0x766   :  { %v1461_v57 = vpop.f32.mrf.mxu1  ;;  %v1636_v58 = vpop.f32.mrf.mxu0 }
 0x767   :  { %2227 = vtanh.f32 %v1639_v55  ;;  %v1640_v9 = vmul.f32 0.5, %v1635_v56 }
 0x768   :  { %v1462_v59 = vpop.f32.mrf.mxu1  ;;  %v1637_v60 = vpop.f32.mrf.mxu0 }
 0x769   :  { %2229 = vtanh.f32 %v1640_v9 }
 0x774   :  { %v2228_v13 = vpop.eup %2227 }
 0x775   :  { %v1643_v14 = vadd.f32 1.0, %v2228_v13 }
 0x776   :  { %v2230_v16 = vpop.eup %2229 }
 0x777   :  { %v1645_v18 = vmul.f32 0.5, %v1643_v14  ;;  %v1644_v19 = vadd.f32 1.0, %v2230_v16 }
 0x779   :  { %v1647_v20 = vmul.f32 %v1645_v18, %v1458_v17  ;;  %v1646_v22 = vmul.f32 0.5, %v1644_v19 }
 0x77b   :  { %v1648_v23 = vmul.f32 %v1646_v22, %v1460_v21  ;;  %v1649_v24 = vadd.f32 %v1647_v20, %v2619_v7 }
 0x77d   :  { %v1650_v25 = vadd.f32 %v1648_v23, %v2622_v26  ;;  %v1651_v38 = vpack.c.bf16 %v1649_v24, %v1649_v24 }
 0x77f   :  { %v1652_v37 = vpack.c.bf16 %v1650_v25, %v1650_v25 }
 0x781   :  { %1971 = vmatprep.mubr.msk.bf16.mxu1 %vm316_vm3, %v1652_v37 }
 0x782   :  { %1776 = vmatmul.mubr.bf16.vlgmr.msra.gmra.mxu1 %v1651_v38 }
 0x842   :  { %v1777_v46 = vpop.f32.mrf.mxu1 }
 0x843   :  { %v1778_v39 = vadd.f32 %v1960_v44, %v1777_v46 }
 0x844   :  { %v1779_v40 = vpop.f32.mrf.mxu1 }
 0x845   :  { %v1783_v61 = vmul.f32 %v1778_v39, %v2500_v33 }
 0x846   :  { %v1780_v62 = vpop.f32.mrf.mxu1 }
 0x847   :  { %v1784_v7 = vadd.f32 %v1783_v61, %v2440_v3 }
 0x848   :  { %v1781_v26 = vpop.f32.mrf.mxu1 }
 0x849   :  { %1786 = vst.msk [vmem:[#allocation10] sm:$0xff] %vm1785_vm4, %v1784_v7 }
 0x84a   :  { %2322 = shalt.err (!%p2319_p10)
}
 0x84b   :  { %1796 = dma.vmem_to_hbm [thread:$0]  %s1794_s14, 128, %s2717_s12, [#allocation4]  }
 0x84c   :  { %2337 = dma.done.wait [#allocation4], 128  }
 0x84d   :  { %2338 = vsyncadd [#allocation4], 4294967168 }
 0x84e   :  { %1800 = vsyncpa [#allocation3], 1 }
 0x84f   :  { %1801 = vsyncpa [#allocation6], 1 }
 0x850   :  { %1802 = vsyncpa [#allocation9], 1 }
 0x851   :  { %1803 = vsyncpa [#allocation4], 1 }

</bundles_post_ra>
